<compile_context>
chip_gen: v7x
topology: tpu7x:2x2x1
jax: 0.10.0
libtpu: 0.0.40
codegen_flags: <defaults>
</compile_context>

<pallas_src>
import functools

import jax
import jax.numpy as jnp
from jax.experimental import pallas as pl
from jax.experimental.pallas import tpu as pltpu


# ----------------------------- in-kernel helpers -----------------------------

def _layernorm(x, gamma, beta, eps=1e-12):
    # x: (S, H) f32; gamma/beta: (1, H) f32
    mu = jnp.mean(x, axis=-1, keepdims=True)
    var = jnp.mean((x - mu) ** 2, axis=-1, keepdims=True)
    return (x - mu) * jax.lax.rsqrt(var + eps) * gamma + beta


def _softmax_last(x):
    m = jnp.max(x, axis=-1, keepdims=True)
    e = jnp.exp(x - m)
    return e * pl.reciprocal(jnp.sum(e, axis=-1, keepdims=True), approx=True)


# --------------------------- fused BERT encoder kernel ------------------------

def bert_encoder_kernel(emb_ref, bias_ref, eg_ref, eb_ref,
                        wqkv_ref, bqkv_ref, wo_ref, bo_ref, ln1g_ref, ln1b_ref,
                        wi_ref, bi_ref, wf_ref, bf_ref, ln2g_ref, ln2b_ref,
                        h_ref, x_sc, *, num_heads):
    """One (batch b, layer l) grid step. Hidden state stays resident in x_sc."""
    l = pl.program_id(1)

    # Layer 0: embedding LayerNorm fused here.
    @pl.when(l == 0)
    def _():
        x_sc[...] = _layernorm(emb_ref[0].astype(jnp.float32), eg_ref[...], eb_ref[...])

    x = x_sc[...]                       # (S, H) f32, resident in VMEM across layers
    bias = bias_ref[0]                  # (1, S) additive attention-mask bias
    S, H = x.shape
    nh = num_heads
    hd = H // nh
    scale = 1.0 / float(hd) ** 0.5

    x_bf = x.astype(jnp.bfloat16)
    x_b = jnp.broadcast_to(x_bf[None, :, :], (nh, S, H))     # batched over heads

    # --- fused per-head QKV projection: one batched bf16 MXU matmul ---
    qkv = jnp.einsum("hsk,hkd->hsd", x_b, wqkv_ref[0],
                     preferred_element_type=jnp.float32) + bqkv_ref[0]   # (nh, S, 3hd) f32
    q = qkv[:, :, 0 * hd:1 * hd].astype(jnp.bfloat16)
    k = qkv[:, :, 1 * hd:2 * hd].astype(jnp.bfloat16)
    v = qkv[:, :, 2 * hd:3 * hd].astype(jnp.bfloat16)

    # --- batched-over-heads attention (f32 softmax) ---
    scores = jnp.einsum("hqd,hkd->hqk", q, k,
                        preferred_element_type=jnp.float32) * scale      # (nh, S, S)
    scores = scores + bias[None, :, :]                                   # broadcast once
    probs = _softmax_last(scores)
    ctx = jnp.einsum("hqk,hkd->hqd", probs.astype(jnp.bfloat16), v,
                     preferred_element_type=jnp.float32)                 # (nh, S, hd)

    # --- output projection: per-head (hd x H) matmul summed over heads ---
    attn = jnp.einsum("hqd,hdk->hqk", ctx.astype(jnp.bfloat16), wo_ref[0],
                      preferred_element_type=jnp.float32)                # (nh, S, H)
    attn_out = jnp.sum(attn, axis=0) + bo_ref[0]                         # (S, H)

    x1 = _layernorm(x + attn_out, ln1g_ref[0], ln1b_ref[0])

    # --- feed forward ---
    inter = jnp.dot(x1.astype(jnp.bfloat16), wi_ref[0],
                    preferred_element_type=jnp.float32) + bi_ref[0]
    inter = jax.nn.gelu(inter, approximate=True)
    ffn = jnp.dot(inter.astype(jnp.bfloat16), wf_ref[0],
                  preferred_element_type=jnp.float32) + bf_ref[0]
    out = _layernorm(x1 + ffn, ln2g_ref[0], ln2b_ref[0])

    x_sc[...] = out                     # carry to next layer (same batch element)

    @pl.when(l == pl.num_programs(1) - 1)
    def _():
        h_ref[0] = out                  # write last_hidden_state once per batch element


# ------------------------------ kernel wrapper --------------------------------

def _vmem_limit_bytes(S, H, I, nh, hd):
    """Explicit VMEM budget: 2x double-buffered blocks + intermediates + headroom."""
    f32, bf16 = 4, 2
    blocks = (S * H * f32 + S * f32 + 2 * H * f32
              + nh * H * 3 * hd * bf16 + nh * 3 * hd * f32
              + nh * hd * H * bf16 + 6 * H * f32
              + H * I * bf16 + I * f32 + I * H * bf16)
    out = S * H * f32
    interm = (nh * S * 3 * hd + 4 * nh * S * hd + 2 * nh * S * S
              + nh * S * H + 6 * S * H + 2 * S * I) * f32
    total = 2 * (blocks + out) + S * H * f32 + interm
    return int(max(2 * total, 16 * 1024 * 1024))      # 16 MiB floor, fine on v5e/v6e/v7x


def pallas_bert_encoder(packed, input_ids, attention_mask, token_type_ids):
    cfg = packed["cfg"]
    H, I, nh, L = cfg["hidden"], cfg["inter"], cfg["heads"], cfg["layers"]
    hd = H // nh
    B, S = input_ids.shape

    # Embedding gathers (glue) + HF-style extended attention mask.
    positions = jnp.arange(S, dtype=jnp.int32)
    emb = (packed["word_emb"][input_ids]
           + packed["pos_emb"][positions][None, :, :]
           + packed["type_emb"][token_type_ids]).astype(jnp.float32)
    attn_bias = (1.0 - attention_mask.astype(jnp.float32))[:, None, :] * -10000.0  # (B,1,S)

    def batch_spec(shape):
        return pl.BlockSpec(shape, lambda b, l: (b,) + (0,) * (len(shape) - 1))

    def shared_spec(shape):
        return pl.BlockSpec(shape, lambda b, l: (0,) * len(shape))

    def layer_spec(full_shape):
        blk = (1,) + tuple(full_shape[1:])
        return pl.BlockSpec(blk, lambda b, l: (l,) + (0,) * (len(full_shape) - 1))

    in_specs = [
        batch_spec((1, S, H)),                 # emb
        batch_spec((1, 1, S)),                 # additive attention bias
        shared_spec((1, H)),                   # emb LN gamma
        shared_spec((1, H)),                   # emb LN beta
        layer_spec(packed["wqkv"].shape),      # (L, nh, H, 3hd) bf16
        layer_spec(packed["bqkv"].shape),      # (L, nh, 1, 3hd) f32
        layer_spec(packed["wo"].shape),        # (L, nh, hd, H) bf16
        layer_spec(packed["bo"].shape),        # (L, 1, H) f32
        layer_spec(packed["ln1_g"].shape),
        layer_spec(packed["ln1_b"].shape),
        layer_spec(packed["wi"].shape),        # (L, H, I) bf16
        layer_spec(packed["bi"].shape),        # (L, 1, I) f32
        layer_spec(packed["wf"].shape),        # (L, I, H) bf16
        layer_spec(packed["bf"].shape),
        layer_spec(packed["ln2_g"].shape),
        layer_spec(packed["ln2_b"].shape),
    ]

    hidden = pl.pallas_call(
        functools.partial(bert_encoder_kernel, num_heads=nh),
        out_shape=jax.ShapeDtypeStruct((B, S, H), jnp.float32),
        grid_spec=pltpu.PrefetchScalarGridSpec(
            num_scalar_prefetch=0,
            grid=(B, L),                              # batch parallel, layers innermost
            in_specs=in_specs,
            out_specs=pl.BlockSpec((1, S, H), lambda b, l: (b, 0, 0)),
            scratch_shapes=[pltpu.VMEM((S, H), jnp.float32)],
        ),
        compiler_params=pltpu.CompilerParams(
            dimension_semantics=("parallel", "arbitrary"),
            vmem_limit_bytes=_vmem_limit_bytes(S, H, I, nh, hd),
        ),
    )(emb, attn_bias, packed["emb_ln_g"], packed["emb_ln_b"],
      packed["wqkv"], packed["bqkv"], packed["wo"], packed["bo"],
      packed["ln1_g"], packed["ln1_b"],
      packed["wi"], packed["bi"], packed["wf"], packed["bf"],
      packed["ln2_g"], packed["ln2_b"])
    return hidden


def biencoder_forward(q_params, p_params, query_tensors, passage_tensors):
    q_hidden = pallas_bert_encoder(q_params["packed"], **query_tensors)
    p_hidden = pallas_bert_encoder(p_params["packed"], **passage_tensors)
    query_embeddings = q_hidden[:, 0, :]      # [CLS] token
    passage_embeddings = p_hidden[:, 0, :]
    # nn.Dropout(p=0.1): identity in eval mode
    return query_embeddings, passage_embeddings


def compute_loss(scores, labels):
    # F.nll_loss(F.log_softmax(scores, dim=1), labels)
    logp = jax.nn.log_softmax(scores, axis=1)
    return -jnp.mean(jnp.take_along_axis(logp, labels[:, None], axis=1))


# --------------------------- deterministic param init -------------------------

def init_bert_params(key, cfg):
    H, I = cfg["hidden"], cfg["inter"]

    def dense(k, fi, fo):
        kw, kb = jax.random.split(k)
        w = 0.02 * jax.random.normal(kw, (fi, fo), jnp.float32)
        b = 0.01 * jax.random.normal(kb, (1, fo), jnp.float32)
        return w, b

    keys = jax.random.split(key, 4 + cfg["layers"])
    params = {
        "cfg": cfg,
        "word_emb": 0.02 * jax.random.normal(keys[0], (cfg["vocab"], H), jnp.float32),
        "pos_emb": 0.02 * jax.random.normal(keys[1], (cfg["max_pos"], H), jnp.float32),
        "type_emb": 0.02 * jax.random.normal(keys[2], (cfg["types"], H), jnp.float32),
        "emb_ln_g": jnp.ones((1, H), jnp.float32),
        "emb_ln_b": jnp.zeros((1, H), jnp.float32),
        "layers": [],
    }
    for li in range(cfg["layers"]):
        lk = jax.random.split(keys[4 + li], 6)
        wq, bq = dense(lk[0], H, H)
        wk, bk = dense(lk[1], H, H)
        wv, bv = dense(lk[2], H, H)
        wo, bo = dense(lk[3], H, H)
        wi, bi = dense(lk[4], H, I)
        wf, bf = dense(lk[5], I, H)
        params["layers"].append(dict(
            wq=wq, bq=bq, wk=wk, bk=bk, wv=wv, bv=bv, wo=wo, bo=bo,
            ln1_g=jnp.ones((1, H), jnp.float32), ln1_b=jnp.zeros((1, H), jnp.float32),
            wi=wi, bi=bi, wf=wf, bf=bf,
            ln2_g=jnp.ones((1, H), jnp.float32), ln2_b=jnp.zeros((1, H), jnp.float32),
        ))
    return params


def pack_encoder_params(params):
    """Stack per-layer weights into (L, ...) arrays in the per-head layout the kernel wants."""
    cfg = params["cfg"]
    H, nh = cfg["hidden"], cfg["heads"]
    hd = H // nh

    def stack(fn):
        return jnp.stack([fn(lp) for lp in params["layers"]], axis=0)

    def heads_w(w):     # (H, H) -> (nh, H, hd)
        return w.reshape(H, nh, hd).transpose(1, 0, 2)

    def heads_b(b):     # (1, H) -> (nh, 1, hd)
        return b.reshape(1, nh, hd).transpose(1, 0, 2)

    def qkv_w(lp):      # (nh, H, 3*hd): per-head [Wq_h | Wk_h | Wv_h]
        return jnp.concatenate([heads_w(lp["wq"]), heads_w(lp["wk"]), heads_w(lp["wv"])], axis=-1)

    def qkv_b(lp):      # (nh, 1, 3*hd)
        return jnp.concatenate([heads_b(lp["bq"]), heads_b(lp["bk"]), heads_b(lp["bv"])], axis=-1)

    return {
        "cfg": cfg,
        "word_emb": params["word_emb"],
        "pos_emb": params["pos_emb"],
        "type_emb": params["type_emb"],
        "emb_ln_g": params["emb_ln_g"],
        "emb_ln_b": params["emb_ln_b"],
        "wqkv": stack(qkv_w).astype(jnp.bfloat16),                              # (L, nh, H, 3hd)
        "bqkv": stack(qkv_b),                                                   # (L, nh, 1, 3hd)
        "wo": stack(lambda lp: lp["wo"].reshape(nh, hd, H)).astype(jnp.bfloat16),  # (L, nh, hd, H)
        "bo": stack(lambda lp: lp["bo"]),
        "ln1_g": stack(lambda lp: lp["ln1_g"]),
        "ln1_b": stack(lambda lp: lp["ln1_b"]),
        "wi": stack(lambda lp: lp["wi"]).astype(jnp.bfloat16),                  # (L, H, I)
        "bi": stack(lambda lp: lp["bi"]),
        "wf": stack(lambda lp: lp["wf"]).astype(jnp.bfloat16),                  # (L, I, H)
        "bf": stack(lambda lp: lp["bf"]),
        "ln2_g": stack(lambda lp: lp["ln2_g"]),
        "ln2_b": stack(lambda lp: lp["ln2_b"]),
    }


# ------------------------------ pure-JAX reference -----------------------------

def _ref_ln(x, g, b, eps=1e-12):
    mu = x.mean(-1, keepdims=True)
    var = ((x - mu) ** 2).mean(-1, keepdims=True)
    return (x - mu) / jnp.sqrt(var + eps) * g + b


def ref_bert_encoder(params, input_ids, attention_mask, token_type_ids):
    cfg = params["cfg"]
    H, nh = cfg["hidden"], cfg["heads"]
    hd = H // nh
    B, S = input_ids.shape
    pos = jnp.arange(S, dtype=jnp.int32)
    x = (params["word_emb"][input_ids] + params["pos_emb"][pos][None, :, :]
         + params["type_emb"][token_type_ids])
    x = _ref_ln(x, params["emb_ln_g"], params["emb_ln_b"])
    bias = (1.0 - attention_mask.astype(jnp.float32))[:, None, None, :] * -10000.0
    for lp in params["layers"]:
        q = (x @ lp["wq"] + lp["bq"]).reshape(B, S, nh, hd).transpose(0, 2, 1, 3)
        k = (x @ lp["wk"] + lp["bk"]).reshape(B, S, nh, hd).transpose(0, 2, 1, 3)
        v = (x @ lp["wv"] + lp["bv"]).reshape(B, S, nh, hd).transpose(0, 2, 1, 3)
        s = q @ k.transpose(0, 1, 3, 2) / (hd ** 0.5) + bias
        p = jax.nn.softmax(s, axis=-1)
        ctx = (p @ v).transpose(0, 2, 1, 3).reshape(B, S, H)
        x = _ref_ln(x + ctx @ lp["wo"] + lp["bo"], lp["ln1_g"], lp["ln1_b"])
        inter = jax.nn.gelu(x @ lp["wi"] + lp["bi"], approximate=True)
        x = _ref_ln(x + inter @ lp["wf"] + lp["bf"], lp["ln2_g"], lp["ln2_b"])
    return x


# ------------------------------------ main -------------------------------------

if __name__ == "__main__":
    cfg = dict(vocab=100, hidden=32, heads=2, inter=64, layers=2, max_pos=16, types=2)
    B, S = 2, 8

    key = jax.random.PRNGKey(0)
    kq, kp, kd1, kd2 = jax.random.split(key, 4)

    q_params = init_bert_params(kq, cfg)     # queryEncoder (separate weights)
    p_params = init_bert_params(kp, cfg)     # passageEncoder
    q_params["packed"] = pack_encoder_params(q_params)
    p_params["packed"] = pack_encoder_params(p_params)

    query_tensors = {
        "input_ids": jax.random.randint(kd1, (B, S), 0, cfg["vocab"], dtype=jnp.int32),
        "attention_mask": jnp.ones((B, S), jnp.int32),
        "token_type_ids": jnp.zeros((B, S), jnp.int32),
    }
    passage_tensors = {
        "input_ids": jax.random.randint(kd2, (B, S), 0, cfg["vocab"], dtype=jnp.int32),
        "attention_mask": jnp.concatenate(
            [jnp.ones((B, S - 2), jnp.int32), jnp.zeros((B, 2), jnp.int32)], axis=1),
        "token_type_ids": jnp.zeros((B, S), jnp.int32),
    }

    q_emb, p_emb = biencoder_forward(q_params, p_params, query_tensors, passage_tensors)
    jax.block_until_ready((q_emb, p_emb))

    assert q_emb.shape == (B, cfg["hidden"]) and p_emb.shape == (B, cfg["hidden"])
    assert bool(jnp.all(jnp.isfinite(q_emb))) and bool(jnp.all(jnp.isfinite(p_emb)))

    # numerical sanity vs. pure-JAX f32 reference (bf16 MXU path -> lenient tolerance)
    q_ref = ref_bert_encoder(q_params, **query_tensors)[:, 0, :]
    p_ref = ref_bert_encoder(p_params, **passage_tensors)[:, 0, :]
    max_diff = max(float(jnp.max(jnp.abs(q_emb - q_ref))),
                   float(jnp.max(jnp.abs(p_emb - p_ref))))
    assert max_diff < 0.15, f"kernel vs reference mismatch: {max_diff}"

    # sanity: in-batch contrastive loss like compute_loss
    scores = q_emb @ p_emb.T
    loss = compute_loss(scores, jnp.arange(B, dtype=jnp.int32))
    jax.block_until_ready(loss)

    print("KERNEL_OK")
</pallas_src>

<mosaic_0001>
module attributes {stable_mosaic.version = 11 : i64} {
  func.func @bert_encoder_kernel(%arg0: i32, %arg1: i32, %arg2: memref<1x8x32xf32, #tpu.memory_space<vmem>>, %arg3: memref<1x1x8xf32, #tpu.memory_space<vmem>>, %arg4: memref<1x32xf32, #tpu.memory_space<vmem>>, %arg5: memref<1x32xf32, #tpu.memory_space<vmem>>, %arg6: memref<1x2x32x48xbf16, #tpu.memory_space<vmem>>, %arg7: memref<1x2x1x48xf32, #tpu.memory_space<vmem>>, %arg8: memref<1x2x16x32xbf16, #tpu.memory_space<vmem>>, %arg9: memref<1x1x32xf32, #tpu.memory_space<vmem>>, %arg10: memref<1x1x32xf32, #tpu.memory_space<vmem>>, %arg11: memref<1x1x32xf32, #tpu.memory_space<vmem>>, %arg12: memref<1x32x64xbf16, #tpu.memory_space<vmem>>, %arg13: memref<1x1x64xf32, #tpu.memory_space<vmem>>, %arg14: memref<1x64x32xbf16, #tpu.memory_space<vmem>>, %arg15: memref<1x1x32xf32, #tpu.memory_space<vmem>>, %arg16: memref<1x1x32xf32, #tpu.memory_space<vmem>>, %arg17: memref<1x1x32xf32, #tpu.memory_space<vmem>>, %arg18: memref<1x8x32xf32, #tpu.memory_space<vmem>>, %arg19: memref<8x32xf32, #tpu.memory_space<vmem>>) attributes {dimension_semantics = [#tpu.dimension_semantics<parallel>, #tpu.dimension_semantics<arbitrary>], iteration_bounds = array<i64: 2, 2>, scalar_prefetch = 0 : i64, scratch_operands = 1 : i64, tpu.core_type = #tpu.core_type<tc>, window_params = [{transform_indices = @transform_0, window_bounds = array<i64: 1, 8, 32>}, {transform_indices = @transform_1, window_bounds = array<i64: 1, 1, 8>}, {pipeline_mode = #tpu.pipeline_mode<synchronous>, transform_indices = @transform_2, window_bounds = array<i64: 1, 32>}, {pipeline_mode = #tpu.pipeline_mode<synchronous>, transform_indices = @transform_3, window_bounds = array<i64: 1, 32>}, {transform_indices = @transform_4, window_bounds = array<i64: 1, 2, 32, 48>}, {transform_indices = @transform_5, window_bounds = array<i64: 1, 2, 1, 48>}, {transform_indices = @transform_6, window_bounds = array<i64: 1, 2, 16, 32>}, {transform_indices = @transform_7, window_bounds = array<i64: 1, 1, 32>}, {transform_indices = @transform_8, window_bounds = array<i64: 1, 1, 32>}, {transform_indices = @transform_9, window_bounds = array<i64: 1, 1, 32>}, {transform_indices = @transform_10, window_bounds = array<i64: 1, 32, 64>}, {transform_indices = @transform_11, window_bounds = array<i64: 1, 1, 64>}, {transform_indices = @transform_12, window_bounds = array<i64: 1, 64, 32>}, {transform_indices = @transform_13, window_bounds = array<i64: 1, 1, 32>}, {transform_indices = @transform_14, window_bounds = array<i64: 1, 1, 32>}, {transform_indices = @transform_15, window_bounds = array<i64: 1, 1, 32>}, {transform_indices = @transform_16, window_bounds = array<i64: 1, 8, 32>}]} {
    %c0_i32 = arith.constant 0 : i32
    %0 = arith.cmpi eq, %arg1, %c0_i32 : i32
    %1 = arith.extui %0 : i1 to i32
    %c0_i32_0 = arith.constant 0 : i32
    %2 = arith.cmpi ne, %1, %c0_i32_0 : i32
    scf.if %2 {
      %c0_70 = arith.constant 0 : index
      %c0_71 = arith.constant 0 : index
      %c0_72 = arith.constant 0 : index
      %137 = vector.load %arg2[%c0_70, %c0_71, %c0_72] : memref<1x8x32xf32, #tpu.memory_space<vmem>>, vector<1x8x32xf32>
      %138 = vector.shape_cast %137 : vector<1x8x32xf32> to vector<8x32xf32>
      %c0_73 = arith.constant 0 : index
      %c0_74 = arith.constant 0 : index
      %139 = vector.load %arg4[%c0_73, %c0_74] : memref<1x32xf32, #tpu.memory_space<vmem>>, vector<1x32xf32>
      %c0_75 = arith.constant 0 : index
      %c0_76 = arith.constant 0 : index
      %140 = vector.load %arg5[%c0_75, %c0_76] : memref<1x32xf32, #tpu.memory_space<vmem>>, vector<1x32xf32>
      %cst_77 = arith.constant dense<0.000000e+00> : vector<8xf32>
      %141 = vector.multi_reduction <add>, %138, %cst_77 [1] : vector<8x32xf32> to vector<8xf32>
      %142 = vector.shape_cast %141 : vector<8xf32> to vector<8x1xf32>
      %cst_78 = arith.constant 3.200000e+01 : f32
      %143 = vector.broadcast %cst_78 : f32 to vector<8x1xf32>
      %144 = arith.divf %142, %143 : vector<8x1xf32>
      %145 = vector.broadcast %144 : vector<8x1xf32> to vector<8x32xf32>
      %146 = arith.subf %138, %145 : vector<8x32xf32>
      %147 = arith.mulf %146, %146 : vector<8x32xf32>
      %cst_79 = arith.constant dense<0.000000e+00> : vector<8xf32>
      %148 = vector.multi_reduction <add>, %147, %cst_79 [1] : vector<8x32xf32> to vector<8xf32>
      %149 = vector.shape_cast %148 : vector<8xf32> to vector<8x1xf32>
      %cst_80 = arith.constant 3.200000e+01 : f32
      %150 = vector.broadcast %cst_80 : f32 to vector<8x1xf32>
      %151 = arith.divf %149, %150 : vector<8x1xf32>
      %152 = vector.broadcast %144 : vector<8x1xf32> to vector<8x32xf32>
      %153 = arith.subf %138, %152 : vector<8x32xf32>
      %cst_81 = arith.constant 9.99999996E-13 : f32
      %154 = vector.broadcast %cst_81 : f32 to vector<8x1xf32>
      %155 = arith.addf %151, %154 : vector<8x1xf32>
      %156 = math.rsqrt %155 : vector<8x1xf32>
      %157 = vector.broadcast %156 : vector<8x1xf32> to vector<8x32xf32>
      %158 = arith.mulf %153, %157 : vector<8x32xf32>
      %159 = vector.broadcast %139 : vector<1x32xf32> to vector<8x32xf32>
      %160 = arith.mulf %158, %159 : vector<8x32xf32>
      %161 = vector.broadcast %140 : vector<1x32xf32> to vector<8x32xf32>
      %162 = arith.addf %160, %161 : vector<8x32xf32>
      %c0_82 = arith.constant 0 : index
      %c0_83 = arith.constant 0 : index
      %163 = vector.load %arg19[%c0_82, %c0_83] : memref<8x32xf32, #tpu.memory_space<vmem>>, vector<8x32xf32>
      tpu.vector_store %arg19[%c0_82, %c0_83], %162 {strides = array<i32>} : memref<8x32xf32, #tpu.memory_space<vmem>>, vector<8x32xf32>,
    } else {
    }
    %c0 = arith.constant 0 : index
    %c0_1 = arith.constant 0 : index
    %3 = vector.load %arg19[%c0, %c0_1] : memref<8x32xf32, #tpu.memory_space<vmem>>, vector<8x32xf32>
    %c0_2 = arith.constant 0 : index
    %c0_3 = arith.constant 0 : index
    %c0_4 = arith.constant 0 : index
    %4 = vector.load %arg3[%c0_2, %c0_3, %c0_4] : memref<1x1x8xf32, #tpu.memory_space<vmem>>, vector<1x1x8xf32>
    %5 = vector.shape_cast %4 : vector<1x1x8xf32> to vector<1x8xf32>
    %6 = arith.truncf %3 : vector<8x32xf32> to vector<8x32xbf16>
    %7 = vector.shape_cast %6 : vector<8x32xbf16> to vector<1x8x32xbf16>
    %8 = vector.shape_cast %7 : vector<1x8x32xbf16> to vector<1x8x32xbf16>
    %9 = vector.broadcast %8 : vector<1x8x32xbf16> to vector<2x8x32xbf16>
    %c0_5 = arith.constant 0 : index
    %c0_6 = arith.constant 0 : index
    %c0_7 = arith.constant 0 : index
    %c0_8 = arith.constant 0 : index
    %10 = vector.load %arg6[%c0_5, %c0_6, %c0_7, %c0_8] : memref<1x2x32x48xbf16, #tpu.memory_space<vmem>>, vector<1x2x32x48xbf16>
    %11 = vector.shape_cast %10 : vector<1x2x32x48xbf16> to vector<2x32x48xbf16>
    "tpu.trace_start"() <{level = 10 : i32, message = "hsk,hkd->hsd"}> : () -> ()
    %cst = arith.constant dense<0.000000e+00> : vector<2x8x48xf32>
    %12 = tpu.matmul %9, %11, %cst {dimension_numbers = #tpu.dot_dimension_numbers<[2], [1], [1], [2], [0, 0, 0, 1, 1, 2], [0], [0]>} : vector<2x8x32xbf16>, vector<2x32x48xbf16>, vector<2x8x48xf32> -> vector<2x8x48xf32>
    "tpu.trace_stop"() : () -> ()
    %c0_9 = arith.constant 0 : index
    %c0_10 = arith.constant 0 : index
    %c0_11 = arith.constant 0 : index
    %c0_12 = arith.constant 0 : index
    %13 = vector.load %arg7[%c0_9, %c0_10, %c0_11, %c0_12] : memref<1x2x1x48xf32, #tpu.memory_space<vmem>>, vector<1x2x1x48xf32>
    %14 = vector.shape_cast %13 : vector<1x2x1x48xf32> to vector<2x1x48xf32>
    %15 = vector.broadcast %14 : vector<2x1x48xf32> to vector<2x8x48xf32>
    %16 = arith.addf %12, %15 : vector<2x8x48xf32>
    %17 = vector.extract_strided_slice %16 {offsets = [0, 0, 0], sizes = [2, 8, 16], strides = [1, 1, 1]} : vector<2x8x48xf32> to vector<2x8x16xf32>
    %18 = arith.truncf %17 : vector<2x8x16xf32> to vector<2x8x16xbf16>
    %19 = vector.extract_strided_slice %16 {offsets = [0, 0, 16], sizes = [2, 8, 16], strides = [1, 1, 1]} : vector<2x8x48xf32> to vector<2x8x16xf32>
    %20 = arith.truncf %19 : vector<2x8x16xf32> to vector<2x8x16xbf16>
    %21 = vector.extract_strided_slice %16 {offsets = [0, 0, 32], sizes = [2, 8, 16], strides = [1, 1, 1]} : vector<2x8x48xf32> to vector<2x8x16xf32>
    %22 = arith.truncf %21 : vector<2x8x16xf32> to vector<2x8x16xbf16>
    "tpu.trace_start"() <{level = 10 : i32, message = "hqd,hkd->hqk"}> : () -> ()
    %cst_13 = arith.constant dense<0.000000e+00> : vector<2x8x8xf32>
    %23 = tpu.matmul %18, %20, %cst_13 {dimension_numbers = #tpu.dot_dimension_numbers<[2], [2], [1], [1], [0, 0, 0, 1, 1, 1], [0], [0]>} : vector<2x8x16xbf16>, vector<2x8x16xbf16>, vector<2x8x8xf32> -> vector<2x8x8xf32>
    "tpu.trace_stop"() : () -> ()
    %cst_14 = arith.constant 2.500000e-01 : f32
    %24 = vector.broadcast %cst_14 : f32 to vector<2x8x8xf32>
    %25 = arith.mulf %23, %24 : vector<2x8x8xf32>
    %26 = vector.shape_cast %5 : vector<1x8xf32> to vector<1x1x8xf32>
    %27 = vector.broadcast %26 : vector<1x1x8xf32> to vector<2x8x8xf32>
    %28 = arith.addf %25, %27 : vector<2x8x8xf32>
    %cst_15 = arith.constant dense<0xFF800000> : vector<2x8xf32>
    %29 = vector.multi_reduction <maximumf>, %28, %cst_15 [2] : vector<2x8x8xf32> to vector<2x8xf32>
    %30 = vector.shape_cast %29 : vector<2x8xf32> to vector<2x8x1xf32>
    %31 = vector.broadcast %30 : vector<2x8x1xf32> to vector<2x8x8xf32>
    %32 = arith.subf %28, %31 : vector<2x8x8xf32>
    %33 = math.exp %32 : vector<2x8x8xf32>
    %cst_16 = arith.constant dense<0.000000e+00> : vector<2x8xf32>
    %34 = vector.multi_reduction <add>, %33, %cst_16 [2] : vector<2x8x8xf32> to vector<2x8xf32>
    %35 = vector.shape_cast %34 : vector<2x8xf32> to vector<2x8x1xf32>
    %36 = tpu.reciprocal %35 {approx = true} : vector<2x8x1xf32> -> vector<2x8x1xf32>
    %37 = vector.broadcast %36 : vector<2x8x1xf32> to vector<2x8x8xf32>
    %38 = arith.mulf %33, %37 : vector<2x8x8xf32>
    %39 = arith.truncf %38 : vector<2x8x8xf32> to vector<2x8x8xbf16>
    "tpu.trace_start"() <{level = 10 : i32, message = "hqk,hkd->hqd"}> : () -> ()
    %cst_17 = arith.constant dense<0.000000e+00> : vector<2x8x16xf32>
    %40 = tpu.matmul %39, %22, %cst_17 {dimension_numbers = #tpu.dot_dimension_numbers<[2], [1], [1], [2], [0, 0, 0, 1, 1, 2], [0], [0]>} : vector<2x8x8xbf16>, vector<2x8x16xbf16>, vector<2x8x16xf32> -> vector<2x8x16xf32>
    "tpu.trace_stop"() : () -> ()
    %41 = arith.truncf %40 : vector<2x8x16xf32> to vector<2x8x16xbf16>
    %c0_18 = arith.constant 0 : index
    %c0_19 = arith.constant 0 : index
    %c0_20 = arith.constant 0 : index
    %c0_21 = arith.constant 0 : index
    %42 = vector.load %arg8[%c0_18, %c0_19, %c0_20, %c0_21] : memref<1x2x16x32xbf16, #tpu.memory_space<vmem>>, vector<1x2x16x32xbf16>
    %43 = vector.shape_cast %42 : vector<1x2x16x32xbf16> to vector<2x16x32xbf16>
    "tpu.trace_start"() <{level = 10 : i32, message = "hqd,hdk->hqk"}> : () -> ()
    %cst_22 = arith.constant dense<0.000000e+00> : vector<2x8x32xf32>
    %44 = tpu.matmul %41, %43, %cst_22 {dimension_numbers = #tpu.dot_dimension_numbers<[2], [1], [1], [2], [0, 0, 0, 1, 1, 2], [0], [0]>} : vector<2x8x16xbf16>, vector<2x16x32xbf16>, vector<2x8x32xf32> -> vector<2x8x32xf32>
    "tpu.trace_stop"() : () -> ()
    %cst_23 = arith.constant dense<0.000000e+00> : vector<8x32xf32>
    %45 = vector.multi_reduction <add>, %44, %cst_23 [0] : vector<2x8x32xf32> to vector<8x32xf32>
    %c0_24 = arith.constant 0 : index
    %c0_25 = arith.constant 0 : index
    %c0_26 = arith.constant 0 : index
    %46 = vector.load %arg9[%c0_24, %c0_25, %c0_26] : memref<1x1x32xf32, #tpu.memory_space<vmem>>, vector<1x1x32xf32>
    %47 = vector.shape_cast %46 : vector<1x1x32xf32> to vector<1x32xf32>
    %48 = vector.broadcast %47 : vector<1x32xf32> to vector<8x32xf32>
    %49 = arith.addf %45, %48 : vector<8x32xf32>
    %50 = arith.addf %3, %49 : vector<8x32xf32>
    %c0_27 = arith.constant 0 : index
    %c0_28 = arith.constant 0 : index
    %c0_29 = arith.constant 0 : index
    %51 = vector.load %arg10[%c0_27, %c0_28, %c0_29] : memref<1x1x32xf32, #tpu.memory_space<vmem>>, vector<1x1x32xf32>
    %52 = vector.shape_cast %51 : vector<1x1x32xf32> to vector<1x32xf32>
    %c0_30 = arith.constant 0 : index
    %c0_31 = arith.constant 0 : index
    %c0_32 = arith.constant 0 : index
    %53 = vector.load %arg11[%c0_30, %c0_31, %c0_32] : memref<1x1x32xf32, #tpu.memory_space<vmem>>, vector<1x1x32xf32>
    %54 = vector.shape_cast %53 : vector<1x1x32xf32> to vector<1x32xf32>
    %cst_33 = arith.constant dense<0.000000e+00> : vector<8xf32>
    %55 = vector.multi_reduction <add>, %50, %cst_33 [1] : vector<8x32xf32> to vector<8xf32>
    %56 = vector.shape_cast %55 : vector<8xf32> to vector<8x1xf32>
    %cst_34 = arith.constant 3.200000e+01 : f32
    %57 = vector.broadcast %cst_34 : f32 to vector<8x1xf32>
    %58 = arith.divf %56, %57 : vector<8x1xf32>
    %59 = vector.broadcast %58 : vector<8x1xf32> to vector<8x32xf32>
    %60 = arith.subf %50, %59 : vector<8x32xf32>
    %61 = arith.mulf %60, %60 : vector<8x32xf32>
    %cst_35 = arith.constant dense<0.000000e+00> : vector<8xf32>
    %62 = vector.multi_reduction <add>, %61, %cst_35 [1] : vector<8x32xf32> to vector<8xf32>
    %63 = vector.shape_cast %62 : vector<8xf32> to vector<8x1xf32>
    %cst_36 = arith.constant 3.200000e+01 : f32
    %64 = vector.broadcast %cst_36 : f32 to vector<8x1xf32>
    %65 = arith.divf %63, %64 : vector<8x1xf32>
    %66 = vector.broadcast %58 : vector<8x1xf32> to vector<8x32xf32>
    %67 = arith.subf %50, %66 : vector<8x32xf32>
    %cst_37 = arith.constant 9.99999996E-13 : f32
    %68 = vector.broadcast %cst_37 : f32 to vector<8x1xf32>
    %69 = arith.addf %65, %68 : vector<8x1xf32>
    %70 = math.rsqrt %69 : vector<8x1xf32>
    %71 = vector.broadcast %70 : vector<8x1xf32> to vector<8x32xf32>
    %72 = arith.mulf %67, %71 : vector<8x32xf32>
    %73 = vector.broadcast %52 : vector<1x32xf32> to vector<8x32xf32>
    %74 = arith.mulf %72, %73 : vector<8x32xf32>
    %75 = vector.broadcast %54 : vector<1x32xf32> to vector<8x32xf32>
    %76 = arith.addf %74, %75 : vector<8x32xf32>
    %77 = arith.truncf %76 : vector<8x32xf32> to vector<8x32xbf16>
    %c0_38 = arith.constant 0 : index
    %c0_39 = arith.constant 0 : index
    %c0_40 = arith.constant 0 : index
    %78 = vector.load %arg12[%c0_38, %c0_39, %c0_40] : memref<1x32x64xbf16, #tpu.memory_space<vmem>>, vector<1x32x64xbf16>
    %79 = vector.shape_cast %78 : vector<1x32x64xbf16> to vector<32x64xbf16>
    %cst_41 = arith.constant dense<0.000000e+00> : vector<8x64xf32>
    %80 = tpu.matmul %77, %79, %cst_41 {dimension_numbers = #tpu.dot_dimension_numbers<[1], [0], [0], [1], [0, 0, 1, 1], [], []>} : vector<8x32xbf16>, vector<32x64xbf16>, vector<8x64xf32> -> vector<8x64xf32>
    %c0_42 = arith.constant 0 : index
    %c0_43 = arith.constant 0 : index
    %c0_44 = arith.constant 0 : index
    %81 = vector.load %arg13[%c0_42, %c0_43, %c0_44] : memref<1x1x64xf32, #tpu.memory_space<vmem>>, vector<1x1x64xf32>
    %82 = vector.shape_cast %81 : vector<1x1x64xf32> to vector<1x64xf32>
    %83 = vector.broadcast %82 : vector<1x64xf32> to vector<8x64xf32>
    %84 = arith.addf %80, %83 : vector<8x64xf32>
    %85 = arith.mulf %84, %84 : vector<8x64xf32>
    %86 = arith.mulf %84, %85 : vector<8x64xf32>
    %cst_45 = arith.constant 4.471500e-02 : f32
    %87 = vector.broadcast %cst_45 : f32 to vector<8x64xf32>
    %88 = arith.mulf %87, %86 : vector<8x64xf32>
    %89 = arith.addf %84, %88 : vector<8x64xf32>
    %cst_46 = arith.constant 0.797884583 : f32
    %90 = vector.broadcast %cst_46 : f32 to vector<8x64xf32>
    %91 = arith.mulf %90, %89 : vector<8x64xf32>
    %92 = math.tanh %91 : vector<8x64xf32>
    %cst_47 = arith.constant 1.000000e+00 : f32
    %93 = vector.broadcast %cst_47 : f32 to vector<8x64xf32>
    %94 = arith.addf %93, %92 : vector<8x64xf32>
    %cst_48 = arith.constant 5.000000e-01 : f32
    %95 = vector.broadcast %cst_48 : f32 to vector<8x64xf32>
    %96 = arith.mulf %95, %94 : vector<8x64xf32>
    %97 = arith.mulf %84, %96 : vector<8x64xf32>
    %98 = arith.truncf %97 : vector<8x64xf32> to vector<8x64xbf16>
    %c0_49 = arith.constant 0 : index
    %c0_50 = arith.constant 0 : index
    %c0_51 = arith.constant 0 : index
    %99 = vector.load %arg14[%c0_49, %c0_50, %c0_51] : memref<1x64x32xbf16, #tpu.memory_space<vmem>>, vector<1x64x32xbf16>
    %100 = vector.shape_cast %99 : vector<1x64x32xbf16> to vector<64x32xbf16>
    %cst_52 = arith.constant dense<0.000000e+00> : vector<8x32xf32>
    %101 = tpu.matmul %98, %100, %cst_52 {dimension_numbers = #tpu.dot_dimension_numbers<[1], [0], [0], [1], [0, 0, 1, 1], [], []>} : vector<8x64xbf16>, vector<64x32xbf16>, vector<8x32xf32> -> vector<8x32xf32>
    %c0_53 = arith.constant 0 : index
    %c0_54 = arith.constant 0 : index
    %c0_55 = arith.constant 0 : index
    %102 = vector.load %arg15[%c0_53, %c0_54, %c0_55] : memref<1x1x32xf32, #tpu.memory_space<vmem>>, vector<1x1x32xf32>
    %103 = vector.shape_cast %102 : vector<1x1x32xf32> to vector<1x32xf32>
    %104 = vector.broadcast %103 : vector<1x32xf32> to vector<8x32xf32>
    %105 = arith.addf %101, %104 : vector<8x32xf32>
    %106 = arith.addf %76, %105 : vector<8x32xf32>
    %c0_56 = arith.constant 0 : index
    %c0_57 = arith.constant 0 : index
    %c0_58 = arith.constant 0 : index
    %107 = vector.load %arg16[%c0_56, %c0_57, %c0_58] : memref<1x1x32xf32, #tpu.memory_space<vmem>>, vector<1x1x32xf32>
    %108 = vector.shape_cast %107 : vector<1x1x32xf32> to vector<1x32xf32>
    %c0_59 = arith.constant 0 : index
    %c0_60 = arith.constant 0 : index
    %c0_61 = arith.constant 0 : index
    %109 = vector.load %arg17[%c0_59, %c0_60, %c0_61] : memref<1x1x32xf32, #tpu.memory_space<vmem>>, vector<1x1x32xf32>
    %110 = vector.shape_cast %109 : vector<1x1x32xf32> to vector<1x32xf32>
    %cst_62 = arith.constant dense<0.000000e+00> : vector<8xf32>
    %111 = vector.multi_reduction <add>, %106, %cst_62 [1] : vector<8x32xf32> to vector<8xf32>
    %112 = vector.shape_cast %111 : vector<8xf32> to vector<8x1xf32>
    %cst_63 = arith.constant 3.200000e+01 : f32
    %113 = vector.broadcast %cst_63 : f32 to vector<8x1xf32>
    %114 = arith.divf %112, %113 : vector<8x1xf32>
    %115 = vector.broadcast %114 : vector<8x1xf32> to vector<8x32xf32>
    %116 = arith.subf %106, %115 : vector<8x32xf32>
    %117 = arith.mulf %116, %116 : vector<8x32xf32>
    %cst_64 = arith.constant dense<0.000000e+00> : vector<8xf32>
    %118 = vector.multi_reduction <add>, %117, %cst_64 [1] : vector<8x32xf32> to vector<8xf32>
    %119 = vector.shape_cast %118 : vector<8xf32> to vector<8x1xf32>
    %cst_65 = arith.constant 3.200000e+01 : f32
    %120 = vector.broadcast %cst_65 : f32 to vector<8x1xf32>
    %121 = arith.divf %119, %120 : vector<8x1xf32>
    %122 = vector.broadcast %114 : vector<8x1xf32> to vector<8x32xf32>
    %123 = arith.subf %106, %122 : vector<8x32xf32>
    %cst_66 = arith.constant 9.99999996E-13 : f32
    %124 = vector.broadcast %cst_66 : f32 to vector<8x1xf32>
    %125 = arith.addf %121, %124 : vector<8x1xf32>
    %126 = math.rsqrt %125 : vector<8x1xf32>
    %127 = vector.broadcast %126 : vector<8x1xf32> to vector<8x32xf32>
    %128 = arith.mulf %123, %127 : vector<8x32xf32>
    %129 = vector.broadcast %108 : vector<1x32xf32> to vector<8x32xf32>
    %130 = arith.mulf %128, %129 : vector<8x32xf32>
    %131 = vector.broadcast %110 : vector<1x32xf32> to vector<8x32xf32>
    %132 = arith.addf %130, %131 : vector<8x32xf32>
    %c0_67 = arith.constant 0 : index
    %c0_68 = arith.constant 0 : index
    %133 = vector.load %arg19[%c0_67, %c0_68] : memref<8x32xf32, #tpu.memory_space<vmem>>, vector<8x32xf32>
    tpu.vector_store %arg19[%c0_67, %c0_68], %132 {strides = array<i32>} : memref<8x32xf32, #tpu.memory_space<vmem>>, vector<8x32xf32>,
    %c1_i32 = arith.constant 1 : i32
    %134 = arith.cmpi eq, %arg1, %c1_i32 : i32
    %135 = arith.extui %134 : i1 to i32
    %c0_i32_69 = arith.constant 0 : i32
    %136 = arith.cmpi ne, %135, %c0_i32_69 : i32
    scf.if %136 {
      %c0_70 = arith.constant 0 : index
      %c0_71 = arith.constant 0 : index
      %c0_72 = arith.constant 0 : index
      %137 = vector.load %arg18[%c0_70, %c0_71, %c0_72] : memref<1x8x32xf32, #tpu.memory_space<vmem>>, vector<1x8x32xf32>
      %138 = vector.shape_cast %137 : vector<1x8x32xf32> to vector<8x32xf32>
      %139 = vector.shape_cast %132 : vector<8x32xf32> to vector<1x8x32xf32>
      tpu.vector_store %arg18[%c0_70, %c0_71, %c0_72], %139 {strides = array<i32>} : memref<1x8x32xf32, #tpu.memory_space<vmem>>, vector<1x8x32xf32>,
    } else {
    }
    return
  }
  func.func @transform_0(%arg0: i32, %arg1: i32) -> (i32, i32, i32) {
    %c0_i32 = arith.constant 0 : i32
    %c0_i32_0 = arith.constant 0 : i32
    %c0_i32_1 = arith.constant 0 : i32
    return %arg0, %c0_i32, %c0_i32_0 : i32, i32, i32
  }
  func.func @transform_1(%arg0: i32, %arg1: i32) -> (i32, i32, i32) {
    %c0_i32 = arith.constant 0 : i32
    %c0_i32_0 = arith.constant 0 : i32
    %c0_i32_1 = arith.constant 0 : i32
    return %arg0, %c0_i32, %c0_i32_0 : i32, i32, i32
  }
  func.func @transform_2(%arg0: i32, %arg1: i32) -> (i32, i32) {
    %c0_i32 = arith.constant 0 : i32
    %c0_i32_0 = arith.constant 0 : i32
    %c0_i32_1 = arith.constant 0 : i32
    return %c0_i32, %c0_i32_0 : i32, i32
  }
  func.func @transform_3(%arg0: i32, %arg1: i32) -> (i32, i32) {
    %c0_i32 = arith.constant 0 : i32
    %c0_i32_0 = arith.constant 0 : i32
    %c0_i32_1 = arith.constant 0 : i32
    return %c0_i32, %c0_i32_0 : i32, i32
  }
  func.func @transform_4(%arg0: i32, %arg1: i32) -> (i32, i32, i32, i32) {
    %c0_i32 = arith.constant 0 : i32
    %c0_i32_0 = arith.constant 0 : i32
    %c0_i32_1 = arith.constant 0 : i32
    %c0_i32_2 = arith.constant 0 : i32
    return %arg1, %c0_i32, %c0_i32_0, %c0_i32_1 : i32, i32, i32, i32
  }
  func.func @transform_5(%arg0: i32, %arg1: i32) -> (i32, i32, i32, i32) {
    %c0_i32 = arith.constant 0 : i32
    %c0_i32_0 = arith.constant 0 : i32
    %c0_i32_1 = arith.constant 0 : i32
    %c0_i32_2 = arith.constant 0 : i32
    return %arg1, %c0_i32, %c0_i32_0, %c0_i32_1 : i32, i32, i32, i32
  }
  func.func @transform_6(%arg0: i32, %arg1: i32) -> (i32, i32, i32, i32) {
    %c0_i32 = arith.constant 0 : i32
    %c0_i32_0 = arith.constant 0 : i32
    %c0_i32_1 = arith.constant 0 : i32
    %c0_i32_2 = arith.constant 0 : i32
    return %arg1, %c0_i32, %c0_i32_0, %c0_i32_1 : i32, i32, i32, i32
  }
  func.func @transform_7(%arg0: i32, %arg1: i32) -> (i32, i32, i32) {
    %c0_i32 = arith.constant 0 : i32
    %c0_i32_0 = arith.constant 0 : i32
    %c0_i32_1 = arith.constant 0 : i32
    return %arg1, %c0_i32, %c0_i32_0 : i32, i32, i32
  }
  func.func @transform_8(%arg0: i32, %arg1: i32) -> (i32, i32, i32) {
    %c0_i32 = arith.constant 0 : i32
    %c0_i32_0 = arith.constant 0 : i32
    %c0_i32_1 = arith.constant 0 : i32
    return %arg1, %c0_i32, %c0_i32_0 : i32, i32, i32
  }
  func.func @transform_9(%arg0: i32, %arg1: i32) -> (i32, i32, i32) {
    %c0_i32 = arith.constant 0 : i32
    %c0_i32_0 = arith.constant 0 : i32
    %c0_i32_1 = arith.constant 0 : i32
    return %arg1, %c0_i32, %c0_i32_0 : i32, i32, i32
  }
  func.func @transform_10(%arg0: i32, %arg1: i32) -> (i32, i32, i32) {
    %c0_i32 = arith.constant 0 : i32
    %c0_i32_0 = arith.constant 0 : i32
    %c0_i32_1 = arith.constant 0 : i32
    return %arg1, %c0_i32, %c0_i32_0 : i32, i32, i32
  }
  func.func @transform_11(%arg0: i32, %arg1: i32) -> (i32, i32, i32) {
    %c0_i32 = arith.constant 0 : i32
    %c0_i32_0 = arith.constant 0 : i32
    %c0_i32_1 = arith.constant 0 : i32
    return %arg1, %c0_i32, %c0_i32_0 : i32, i32, i32
  }
  func.func @transform_12(%arg0: i32, %arg1: i32) -> (i32, i32, i32) {
    %c0_i32 = arith.constant 0 : i32
    %c0_i32_0 = arith.constant 0 : i32
    %c0_i32_1 = arith.constant 0 : i32
    return %arg1, %c0_i32, %c0_i32_0 : i32, i32, i32
  }
  func.func @transform_13(%arg0: i32, %arg1: i32) -> (i32, i32, i32) {
    %c0_i32 = arith.constant 0 : i32
    %c0_i32_0 = arith.constant 0 : i32
    %c0_i32_1 = arith.constant 0 : i32
    return %arg1, %c0_i32, %c0_i32_0 : i32, i32, i32
  }
  func.func @transform_14(%arg0: i32, %arg1: i32) -> (i32, i32, i32) {
    %c0_i32 = arith.constant 0 : i32
    %c0_i32_0 = arith.constant 0 : i32
    %c0_i32_1 = arith.constant 0 : i32
    return %arg1, %c0_i32, %c0_i32_0 : i32, i32, i32
  }
  func.func @transform_15(%arg0: i32, %arg1: i32) -> (i32, i32, i32) {
    %c0_i32 = arith.constant 0 : i32
    %c0_i32_0 = arith.constant 0 : i32
    %c0_i32_1 = arith.constant 0 : i32
    return %arg1, %c0_i32, %c0_i32_0 : i32, i32, i32
  }
  func.func @transform_16(%arg0: i32, %arg1: i32) -> (i32, i32, i32) {
    %c0_i32 = arith.constant 0 : i32
    %c0_i32_0 = arith.constant 0 : i32
    %c0_i32_1 = arith.constant 0 : i32
    return %arg0, %c0_i32, %c0_i32_0 : i32, i32, i32
  }
}

</mosaic_0001>

<bundles_post_ra>
// kernel: tpu_custom_call.1
= control target key start
LH: loop header
LB: loop body
LE: loop exit
PB: predicated region body
PF: predicated region fallthrough
CT: control target
= control target key end

     0   :  { %s3030_s0 = inlined_call_operand.hbm [shape: f32[2,8,32], index: 0, kind: input, shape index: {}]   ;;  %s3031_s1 = inlined_call_operand.vmem [shape: f32[2,1,8], index: 1, kind: input, shape index: {}]   ;;  %s3032_s2 = inlined_call_operand.vmem [shape: f32[1,32], index: 2, kind: input, shape index: {}]   ;;  %s3033_s3 = inlined_call_operand.hbm [shape: f32[1,32], index: 3, kind: input, shape index: {}]   ;;  %s3034_s4 = inlined_call_operand.vmem [shape: bf16[2,2,32,48], index: 4, kind: input, shape index: {}]   ;;  %s3035_s5 = inlined_call_operand.vmem [shape: f32[2,2,1,48], index: 5, kind: input, shape index: {}]   ;;  %s3036_s6 = inlined_call_operand.vmem [shape: bf16[2,2,16,32], index: 6, kind: input, shape index: {}]   ;;  %s3037_s7 = inlined_call_operand.vmem [shape: f32[2,1,32], index: 7, kind: input, shape index: {}]   ;;  %s3038_s8 = inlined_call_operand.vmem [shape: f32[2,1,32], index: 8, kind: input, shape index: {}]   ;;  %s3039_s9 = inlined_call_operand.vmem [shape: f32[2,1,32], index: 9, kind: input, shape index: {}]   ;;  %s3040_s10 = inlined_call_operand.hbm [shape: bf16[2,32,64], index: 10, kind: input, shape index: {}]   ;;  %s3041_s11 = inlined_call_operand.hbm [shape: f32[2,1,64], index: 11, kind: input, shape index: {}]   ;;  %s3042_s12 = inlined_call_operand.vmem [shape: bf16[2,64,32], index: 12, kind: input, shape index: {}]   ;;  %s3043_s13 = inlined_call_operand.vmem [shape: f32[2,1,32], index: 13, kind: input, shape index: {}]   ;;  %s3044_s14 = inlined_call_operand.vmem [shape: f32[2,1,32], index: 14, kind: input, shape index: {}]   ;;  %s3045_s15 = inlined_call_operand.vmem [shape: f32[2,1,32], index: 15, kind: input, shape index: {}]   ;;  %s3046_s16 = inlined_call_operand.hbm [shape: f32[2,8,32], index: 16, kind: output, shape index: {}]  }
   0x1   :  { %3077 = sst [smem:[#allocation31_spill]] %s3030_s0 }
   0x2   :  { %3078 = sst [smem:[#allocation32_spill]] %s3032_s2 }
   0x3   :  { %3079 = sst [smem:[#allocation33_spill]] %s3033_s3 }
   0x4   :  { %3080 = sst [smem:[#allocation34_spill]] %s3034_s4 }
   0x5   :  { %3081 = sst [smem:[#allocation35_spill]] %s3035_s5 }
   0x6   :  { %3082 = sst [smem:[#allocation36_spill]] %s3036_s6 }
   0x7   :  { %3083 = sst [smem:[#allocation37_spill]] %s3037_s7 }
   0x8   :  { %3084 = sst [smem:[#allocation38_spill]] %s3038_s8 }
   0x9   :  { %3085 = sst [smem:[#allocation39_spill]] %s3039_s9 }
   0xa   :  { %3086 = sst [smem:[#allocation40_spill]] %s3040_s10 }
   0xb   :  { %3087 = sst [smem:[#allocation41_spill]] %s3041_s11 }
   0xc   :  { %3088 = sst [smem:[#allocation42_spill]] %s3042_s12 }
   0xd   :  { %3089 = sst [smem:[#allocation43_spill]] %s3043_s13 }
   0xe   :  { %3090 = sst [smem:[#allocation44_spill]] %s3044_s14 }
   0xf   :  { %3091 = sst [smem:[#allocation45_spill]] %s3045_s15 }
  0x10   :  { %3092 = sst [smem:[#allocation46_spill]] %s3046_s16 }
  0x11   :  { %21 = vsyncpa [#allocation4], 0 }
  0x12   :  { %23 = vsyncpa [#allocation4 + $0x1], 0 }
  0x13   :  { %24 = vsyncpa [#allocation7], 0 }
  0x14   :  { %25 = vsyncpa [#allocation5], 0 }
  0x15   :  { %27 = vsyncpa [#allocation5 + $0x1], 0  ;;  %s2472_s21 = smov 0   ;;  %s2474_s22 = smov 0  }
  0x16   :  { %s2476_s23 = smov 0   ;;  %s2478_s24 = smov 0  }
  0x17   :  { %s2480_s25 = smov 0   ;;  %s2482_s26 = smov 0  }
  0x18   :  { %s2484_s27 = smov 0   ;;  %s2486_s28 = smov 0  }
  0x19   :  { %s2488_s29 = smov 0   ;;  %s2490_s30 = smov 0  }
  0x1a   :  { %s2492_s0 = smov 0  }
  0x1b LB: > { %3093 = sst [smem:[#allocation15_spill]] %s2338_s22  ;;  %s42_s17 = sadd.s32 1, %s2366_s29  ;;  %s2374_s0 = sphi %s2492_s0, %s33_s0   ;;  %s2370_s30 = sphi %s2490_s30, %s3177_s30   ;;  %s2366_s29 = sphi %s2488_s29, %s3176_s29   ;;  %s2362_s28 = sphi %s2486_s28, %s3175_s28   ;;  %s2358_s27 = sphi %s2484_s27, %s3174_s27   ;;  %s2354_s26 = sphi %s2482_s26, %s3173_s26   ;;  %s2350_s25 = sphi %s2480_s25, %s3172_s25   ;;  %s2346_s24 = sphi %s2478_s24, %s3171_s24   ;;  %s2342_s23 = sphi %s2476_s23, %s3170_s23   ;;  %s2338_s22 = sphi %s2474_s22, %s3169_s22   ;;  %s2334_s21 = sphi %s2472_s21, %s3168_s21  }
  0x1c   : > { %3094 = sst [smem:[#allocation16_spill]] %s2342_s23  ;;  %s45_s18 = sadd.s32 1, %s2370_s30 }
  0x1d   : > { %3095 = sst [smem:[#allocation17_spill]] %s2346_s24  ;;  %p43_p0 = scmp.ge.s32.totalorder %s42_s17, 2 }
  0x1e   : > { %3096 = sst [smem:[#allocation18_spill]] %s2350_s25  ;;  %s52_s19 = sadd.s32 1, %s2354_s26 }
  0x1f   : > { %3097 = sst [smem:[#allocation19_spill]] %s2354_s26  ;;  %p3051_p1 = scmp.ne.s32.totalorder %s2354_s26, %s2350_s25 }
  0x20   : > { %3098 = sst [smem:[#allocation20_spill]] %s2362_s28  ;;  %p60_p2 = scmp.eq.s32.totalorder %s2374_s0, 0 }
  0x21   : > { %3099 = sst [smem:[#allocation21_spill]] %s2366_s29  ;;  %s3179_s17 = smov (%p43_p0, %s42_s17), 0 }
  0x22   : > { %3100 = sst [smem:[#allocation22_spill]] %s2370_s30  ;;  %s3181_s18 = smov (!%p43_p0, %s45_s18), %s2370_s30 }
  0x23   : > { %3101 = sst [smem:[#allocation23_spill]] %s2374_s0  ;;  %p2539_p3 = por %p60_p2, %p3051_p1 }
  0x24   : > { %3102 = sst [smem:[#allocation24_spill]] %s3179_s17  ;;  %s299_s16 = ssub.s32 %s2366_s29, %s3179_s17 }
  0x25   : > { %p47_p4 = scmp.ge.s32.totalorder %s3181_s18, 2  ;;  %p300_p5 = scmp.eq.s32.totalorder %s299_s16, 0 }
  0x26   : > { %s302_s2 = sadd.s32 1, %s2342_s23  ;;  %p309_p6 = scmp.ne.s32.totalorder %s2342_s23, %s2338_s22 }
  0x27   : > { %s3183_s18 = smov (%p47_p4, %s3181_s18), 0  ;;  %p2000_p9 = scmp.lt.s32.totalorder %s2374_s0, 4 }
  0x28   : > { %3104 = sst [smem:[#allocation25_spill]] %s3183_s18  ;;  %s49_s14 = ssub.s32 %s2370_s30, %s3183_s18 }
  0x29   : > { %s2551_s15 = scalar_select %p300_p5, %s2342_s23, %s302_s2  }
  0x2a   : > { %p2555_p7 = por %p309_p6, %p60_p2  ;;  %p50_p8 = scmp.eq.s32.totalorder %s49_s14, 0 }
  0x2b   : > { %3105 = sst [smem:[#allocation26_spill]] %s2551_s15  ;;  %s509_s17 = sand.u32 1, %s2374_s0  }
  0x2c   : > { %s2562_s12 = scalar_select %p50_p8, %s2354_s26, %s52_s19  }
  0x2d   : > { %s511_s16 = sand.u32 1, %s2354_s26   ;;  %s1810_s8 = sshll.u32 %s2370_s30, 7 }
  0x2e   : > { %3107 = sst [smem:[#allocation27_spill]] %s2562_s12  ;;  %s1809_s9 = sshll.u32 %s511_s16, 3 }
  0x2f   : > { %s3108_s5 = sld [smem:[#allocation31_spill]]  ;;  %s513_s18 = scalar_lea.vmem [#allocation3], %s1809_s9 }
  0x30   : > { %s520_s15 = sshll.u32 %s513_s18, 4  ;;  %p2573_p10 = pnand %p2000_p9, %p2539_p3  ;;  %s2577_s15 = int_to_ptr.vmem [resolvable:$true] %s520_s15 }
  0x31   : > { %p2581_p11 = pnand %p2000_p9, %p2555_p7  ;;  %s3053_s7 = sand.u32 1, %s2342_s23  }
  0x32   : > { %p2128_p13 = pneg %p2573_p10 }
  0x35   : > { %s2569_s2 = scalar_lea.hbm %s3108_s5, %s1810_s8  ;;  %s2586_s8 = scalar_lea.sflag [#allocation4], %s509_s17 }
  0x36   : > { %s2126_s9 = scalar_lea.hbm %s2569_s2, 128  ;;  %s2131_s20 = scalar_lea.hbm %s3108_s5, 256 }
  0x37   : > { %p2127_p12 = scmp.ne.s32.totalorder %s2569_s2, %s2126_s9  ;;  %p2132_p3 = scmp.lt.u32.totalorder %s2569_s2, %s3108_s5 }
  0x38   : > { %p2133_p4 = scmp.lt.u32.totalorder %s2131_s20, %s2126_s9  ;;  %p2135_p6 = scmp.lt.u32.totalorder %s2126_s9, %s2569_s2 }
  0x39   : > { %p2129_p0 = pnand %p2128_p13, %p2127_p12 }
  0x3a   : > { %p2134_p5 = por %p2133_p4, %p2132_p3 }
  0x3b   : > { %p2130_p2 = pneg %p2129_p0 }
  0x3c   : > { %p2136_p7 = por %p2135_p6, %p2134_p5 }
  0x3e   : > { %p2137_p8 = pnand %p2136_p7, %p2130_p2 }
  0x40   : > { %2140 = shalt.err (!%p2137_p8)
}
  0x41   : > { %s2141_s17 = scalar_lea.vmem %s2577_s15, 128  ;;  %s2376_s18 = smov [#allocation3]  }
  0x42   : > { %p2142_p9 = scmp.ne.s32.totalorder %s2577_s15, %s2141_s17  ;;  %s2146_s19 = sshll.u32 %s2376_s18, 4  ;;  %s2147_s19 = int_to_ptr.vmem [resolvable:$false] %s2146_s19 }
  0x43   : > { %s2148_s13 = scalar_lea.vmem %s2147_s19, 256  ;;  %p2149_p1 = scmp.lt.s32.totalorder %s2577_s15, %s2147_s19 }
  0x44   : > { %p2144_p12 = pnand %p2142_p9, %p2128_p13  ;;  %p2150_p3 = scmp.lt.s32.totalorder %s2148_s13, %s2141_s17 }
  0x46   : > { %p2145_p0 = pneg %p2144_p12  ;;  %p2151_p4 = por %p2150_p3, %p2149_p1 }
  0x48   : > { %p2152_p5 = pnand %p2151_p4, %p2145_p0 }
  0x4a   : > { %2155 = shalt.err (!%p2152_p5)
}
  0x4b   : > { %1988 = dma.hbm_to_vmem [thread:$0]  (!%p2573_p10), %s2569_s2, 128, %s2577_s15, %s2586_s8  }
  0x4c   : > { %s1811_s9 = sshll.u32 %s3053_s7, 4  ;;  %s1867_s20 = sshll.u32 %s2366_s29, 8 }
  0x4d   : > { %s3111_s10 = sld [smem:[#allocation40_spill]]  ;;  %s578_s14 = scalar_lea.vmem [#allocation8], %s1811_s9 }
  0x4e   : > { %s585_s19 = sshll.u32 %s578_s14, 4  ;;  %p3052_p10 = pneg %p2581_p11  ;;  %s2622_s19 = int_to_ptr.vmem [resolvable:$true] %s585_s19 }
  0x53   : > { %s2620_s17 = scalar_lea.hbm %s3111_s10, %s1867_s20  ;;  %s2161_s20 = scalar_lea.hbm %s3111_s10, 512 }
  0x54   : > { %s2156_s13 = scalar_lea.hbm %s2620_s17, 256  ;;  %p2162_p6 = scmp.lt.u32.totalorder %s2620_s17, %s3111_s10 }
  0x55   : > { %p2157_p1 = scmp.ne.s32.totalorder %s2620_s17, %s2156_s13  ;;  %p2163_p7 = scmp.lt.u32.totalorder %s2161_s20, %s2156_s13 }
  0x56   : > { %p2165_p9 = scmp.lt.u32.totalorder %s2156_s13, %s2620_s17 }
  0x57   : > { %p2159_p13 = pnand %p3052_p10, %p2157_p1  ;;  %p2164_p8 = por %p2163_p7, %p2162_p6 }
  0x59   : > { %p2160_p2 = pneg %p2159_p13  ;;  %p2166_p12 = por %p2165_p9, %p2164_p8 }
  0x5b   : > { %p2167_p0 = pnand %p2166_p12, %p2160_p2 }
  0x5d   : > { %2170 = shalt.err (!%p2167_p0)
}
  0x5e   : > { %s2171_s9 = scalar_lea.vmem %s2622_s19, 256  ;;  %s2377_s14 = smov [#allocation8]  }
  0x5f   : > { %p2172_p3 = scmp.ne.s32.totalorder %s2622_s19, %s2171_s9  ;;  %s2176_s15 = sshll.u32 %s2377_s14, 4  ;;  %s2177_s15 = int_to_ptr.vmem [resolvable:$false] %s2176_s15 }
  0x60   : > { %s2178_s2 = scalar_lea.vmem %s2177_s15, 512  ;;  %p2179_p1 = scmp.lt.s32.totalorder %s2622_s19, %s2177_s15 }
  0x61   : > { %p2174_p4 = pnand %p2172_p3, %p3052_p10  ;;  %p2180_p13 = scmp.lt.s32.totalorder %s2178_s2, %s2171_s9 }
  0x63   : > { %p2175_p5 = pneg %p2174_p4  ;;  %p2181_p6 = por %p2180_p13, %p2179_p1 }
  0x65   : > { %p2182_p7 = pnand %p2181_p6, %p2175_p5 }
  0x67   : > { %2185 = shalt.err (!%p2182_p7)
}
  0x68   : > { %s2378_s13 = smov 64   ;;  %s2379_s20 = smov 4  }
  0x69   : > { %1991 = dma.hbm_to_vmem [thread:$0]  (!%p2581_p11), %s2620_s17, 256, %s2622_s19, %s2586_s8, %s2378_s13, %s2378_s13, %s2379_s20  }
  0x6a   : > { %s2651_s16 = sadd.s32 4294967295, %s2374_s0   ;;  %s1805_s18 = sadd.s32 4294967294, %s2374_s0  }
  0x6b   : > { %p65_p2 = scmp.ne.s32.totalorder %s2350_s25, %s2346_s24  ;;  %p3058_p8 = scmp.eq.s32.totalorder %s2651_s16, 0 }
  0x6c   : > { %p315_p9 = scmp.ne.s32.totalorder %s2338_s22, %s2334_s21  ;;  %p469_p12 = scmp.eq.s32.totalorder %s2651_s16, 3 }
  0x6d   : > { %p475_p0 = scmp.eq.s32.totalorder %s1805_s18, 3  ;;  %p2662_p3 = por %p3058_p8, %p65_p2 }
  0x6e   : > { %p2668_p4 = por %p315_p9, %p3058_p8  ;;  %p3114_p5 = scmp.ne.s32.totalorder %s2354_s26, %s2350_s25 }
  0x6f   : > { %s3112_s9 = scalar_select %p2662_p3, 1, 0 }
  0x70   : > { %s3113_s17 = scalar_select %p2668_p4, 1, 0 }
  0x71   : > { %p2675_p1 = por %p469_p12, %p3114_p5  ;;  %p2679_p13 = por %p475_p0, %p65_p2 }
  0x72   : > { %p1806_p6 = scmp.ge.s32.totalorder %s2374_s0, 1  ;;  %p482_p7 = scmp.lt.s32.totalorder %s2374_s0, 5 }
  0x73   : > { %s3115_s19 = scalar_select %p2675_p1, 1, 0 }
  0x74   : > { %s3117_s21 = scalar_select %p2679_p13, 1, 0 }
  0x75   : > { %3116 = sst [smem:[#allocation28_spill]] %s3115_s19  ;;  %p2685_p10 = pnand %p1806_p6, %p482_p7 }
  0x76   : > { %3118 = sst [smem:[#allocation29_spill]] %s3117_s21  ;;  %s2380_s15 = smov [#allocation6]  }
  0x77   : > { %s3119_s14 = scalar_select %p2685_p10, 1, 0 }
  0x78   : > { %s498_s2 = sshll.u32 %s2380_s15, 4  ;;  %p1981_p9 = pneg %p2685_p10  ;;  %s2689_s2 = int_to_ptr.vmem [resolvable:$true] %s498_s2 }
  0x79   : > { %s1814_s13 = sshll.u32 %s2366_s29, 4  ;;  %s3120_s11 = sld [smem:[#allocation41_spill]] }
  0x7a   : > { %s3121_s5 = sand.u32 1, %s2342_s23   ;;  %p2703_p2 = pnand %p1981_p9, %p3058_p8 }
  0x7b   : > { %s598_s10 = scalar_lea.vmem [#allocation9], %s3121_s5  ;;  %p3123_p0 = pneg %p2581_p11 }
  0x7c   : > { %s605_s30 = sshll.u32 %s598_s10, 4  ;;  %s606_s30 = int_to_ptr.vmem [resolvable:$true] %s605_s30 }
  0x7d   : > { %s3122_s15 = scalar_select %p2703_p2, 1, 0 }
  0x7f   : > { %s2697_s7 = scalar_lea.hbm %s3120_s11, %s1814_s13  ;;  %s2191_s18 = scalar_lea.hbm %s3120_s11, 32 }
  0x80   : > { %s2186_s12 = scalar_lea.hbm %s2697_s7, 16  ;;  %p2192_p7 = scmp.lt.u32.totalorder %s2697_s7, %s3120_s11 }
  0x81   : > { %p2187_p12 = scmp.ne.s32.totalorder %s2697_s7, %s2186_s12  ;;  %p2193_p13 = scmp.lt.u32.totalorder %s2191_s18, %s2186_s12 }
  0x82   : > { %p2195_p8 = scmp.lt.u32.totalorder %s2186_s12, %s2697_s7 }
  0x83   : > { %p2189_p5 = pnand %p2187_p12, %p3123_p0  ;;  %p2194_p9 = por %p2193_p13, %p2192_p7 }
  0x85   : > { %p2190_p6 = pneg %p2189_p5  ;;  %p2196_p1 = por %p2195_p8, %p2194_p9 }
  0x87   : > { %p2197_p4 = pnand %p2196_p1, %p2190_p6 }
  0x89   : > { %2200 = shalt.err (!%p2197_p4)
}
  0x8a   : > { %s2201_s5 = scalar_lea.vmem %s606_s30, 16  ;;  %p3124_p12 = pmov %p3123_p0 }
  0x8b   : > { %p2202_p3 = scmp.ne.s32.totalorder %s606_s30, %s2201_s5  ;;  %s2381_s10 = smov [#allocation9]  }
  0x8c   : > { %s2206_s13 = sshll.u32 %s2381_s10, 4  ;;  %s2207_s13 = int_to_ptr.vmem [resolvable:$false] %s2206_s13 }
  0x8d   : > { %p2204_p0 = pnand %p2202_p3, %p3124_p12  ;;  %s2208_s20 = scalar_lea.vmem %s2207_s13, 32 }
  0x8e   : > { %p2209_p10 = scmp.lt.s32.totalorder %s606_s30, %s2207_s13  ;;  %p2210_p2 = scmp.lt.s32.totalorder %s2208_s20, %s2201_s5 }
  0x8f   : > { %p2205_p5 = pneg %p2204_p0 }
  0x90   : > { %p2211_p7 = por %p2210_p2, %p2209_p10 }
  0x92   : > { %p2212_p13 = pnand %p2211_p7, %p2205_p5 }
  0x94   : > { %2215 = shalt.err (!%p2212_p13)
}
  0x95   : > { %1994 = dma.hbm_to_vmem [thread:$0]  (!%p2581_p11), %s2697_s7, 16, %s606_s30, %s2586_s8  }
  0x96   : > { %s3125_s3 = sld [smem:[#allocation33_spill]]  ;;  %p3126_p3 = scmp.ne.s32.totalorder %s3122_s15, 0 }
  0x98   : > { %p2218_p4 = pneg %p3126_p3 }
  0x9c   : > { %s2216_s29 = scalar_lea.hbm %s3125_s3, 16 }
  0x9d   : > { %p2217_p8 = scmp.ne.s32.totalorder %s3125_s3, %s2216_s29  ;;  %p2223_p2 = scmp.lt.u32.totalorder %s2216_s29, %s3125_s3 }
  0x9f   : > { %p2219_p1 = pnand %p2218_p4, %p2217_p8 }
  0xa1   : > { %p2220_p10 = pneg %p2219_p1 }
  0xa3   : > { %p2225_p6 = pnand %p2223_p2, %p2220_p10 }
  0xa5   : > { %2228 = shalt.err (!%p2225_p6)
}
  0xa6   : > { %s2229_s30 = scalar_lea.vmem %s2689_s2, 16  ;;  %s2236_s11 = scalar_lea.vmem %s2689_s2, 32 }
  0xa7   : > { %p2230_p11 = scmp.ne.s32.totalorder %s2689_s2, %s2229_s30  ;;  %p2237_p0 = scmp.lt.s32.totalorder %s2689_s2, %s2689_s2 }
  0xa8   : > { %p2238_p5 = scmp.lt.s32.totalorder %s2236_s11, %s2229_s30 }
  0xa9   : > { %p2232_p9 = pnand %p2230_p11, %p2218_p4 }
  0xaa   : > { %p2239_p7 = por %p2238_p5, %p2237_p0 }
  0xab   : > { %p2233_p12 = pneg %p2232_p9 }
  0xad   : > { %p2240_p13 = pnand %p2239_p7, %p2233_p12 }
  0xaf   : > { %2243 = shalt.err (!%p2240_p13)
}
  0xb0   : > { %1984 = dma.hbm_to_vmem [thread:$0]  (!%p3126_p3), %s3125_s3, 16, %s2689_s2, [#allocation7]  }
  0xb1   : > { %p3127_p8 = scmp.ne.s32.totalorder %s3119_s14, 0 }
  0xb3   : > { %640 = sbr.rel (%p3127_p8) target bundleno = 2960 (0xb90), region = 84 }
  0xba   : > { %s642_s8 = sand.u32 1, %s2651_s16   ;;  %s3064_s13 = sand.u32 1, %s2350_s25  }
  0xbb   : > { %s2755_s20 = sshll.u32 %s3064_s13, 3  ;;  %s643_s12 = scalar_lea.sflag [#allocation4], %s642_s8 }
  0xbc   : > { %p3128_p4 = scmp.ne.s32.totalorder %s3112_s9, 0 }
  0xbe   : > { %2317 = dma.done.wait (%p3128_p4), %s643_s12, 128  }
  0xbf   : > { %2319 = vsyncadd (%p3128_p4), %s643_s12, 4294967168  ;;  %p3129_p3 = scmp.eq.s32.totalorder %s2651_s16, 0 }
  0xc1   : > { %2321 = dma.done.wait (%p3129_p3), [#allocation7], 16   ;;  %p3130_p1 = pmov %p3129_p3 }
  0xc2   : > { %s657_s14 = sand.u32 1, %s2338_s22   ;;  %p3132_p10 = scmp.ne.s32.totalorder %s3113_s17, 0 }
  0xc3   : > { %2323 = vsyncadd (%p3130_p1), [#allocation7], 4294967280  ;;  %s2767_s2 = sshll.u32 %s657_s14, 4 }
  0xc4   : > { %3131 = sst [smem:[#allocation30_spill]] %s2767_s2 }
  0xc5   : > { %2325 = dma.done.wait (%p3132_p10), %s643_s12, 272  }
  0xc6   : > { %2327 = vsyncadd (%p3132_p10), %s643_s12, 4294967024  ;;  %p765_p2 = scmp.lt.s32.totalorder %s2362_s28, 1  ;;  %p768_p6 = scmp.lt.s32.totalorder %s2358_s27, 1 }
  0xc7   : > { %s3133_s4 = sld [smem:[#allocation34_spill]]  ;;  %s3134_s12 = sld [smem:[#allocation35_spill]] }
  0xc8   : > { %s2777_s16 = scalar_select %p765_p2, %s2362_s28, 1 }
  0xc9   : > { %s2780_s9 = scalar_select %p768_p6, %s2358_s27, 1 }
  0xca   : > { %s3136_s17 = sld [smem:[#allocation36_spill]]  ;;  %s3138_s25 = sld [smem:[#allocation39_spill]] }
  0xcb   : > { %s1868_s5 = sshll.u32 %s2780_s9, 5  ;;  %s1822_s10 = sshll.u32 %s2780_s9, 1 }
  0xcc   : > { %s1869_s18 = sshll.u32 %s2780_s9, 4  ;;  %s3140_s26 = sld [smem:[#allocation43_spill]] }
  0xcd   : > { %s2791_s6 = scalar_lea.vmem %s3133_s4, %s1868_s5  ;;  %s2796_s29 = scalar_lea.vmem %s3134_s12, %s1822_s10 }
  0xce   : > { %s3139_s12 = sld [smem:[#allocation42_spill]]  ;;  %s3142_s0 = sld [smem:[#allocation45_spill]] }
  0xcf   : > { %s2833_s11 = scalar_lea.vmem [#allocation9], %s657_s14  ;;  %s764_s4 = scalar_lea.vmem [#allocation10], %s2755_s20 }
  0xd0   : > { %s2806_s21 = scalar_lea.vmem %s3136_s17, %s1869_s18  ;;  %s790_s7 = scalar_lea.vmem %s3138_s25, %s2780_s9 }
  0xd1   : > { %s3141_s17 = sld [smem:[#allocation44_spill]]  ;;  %p1827_p11 = scmp.ne.s32.totalorder %s2358_s27, 0 }
  0xd2   : > { %s798_s3 = scalar_lea.vmem %s3140_s26, %s2780_s9  ;;  %s3143_s25 = scalar_lea.vmem (!%p1827_p11), [#allocation3], %s2755_s20  ;;  %vm813_vm0 = vcmask (!%p1827_p11), 261120   ;;  %v1829_v13 = vld [vmem:[#allocation6] ss:$0 sm:$0xff] (!%p1827_p11) }
  0xd3   : > { %809 = sbr.rel (%p1827_p11) target bundleno = 526 (0x20e), region = 104  ;;  %v810_v0 = vld [vmem:[%s3143_s25] sm:$0xff] (!%p1827_p11)  ;;  %s3144_s2 = sld [smem:[#allocation32_spill]] (!%p1827_p11) }
  0xd4   : > { %s2819_s28 = scalar_lea.vmem %s3139_s12, %s1868_s5  ;;  %s804_s30 = scalar_lea.vmem %s3142_s0, %s2780_s9  ;;  %v814_v1 = vsel (!%p1827_p11), %vm813_vm0, %v810_v0, 0.0 }
  0xd5   : > { %815 = vadd.xlane.f32.xlu0 (!%p1827_p11), %v814_v1 }
  0xd7   : > { %s801_s18 = scalar_lea.vmem %s3141_s17, %s2780_s9 }
  0xd9   : > { %v1828_v11 = vld [vmem:[%s3144_s2] ss:$0 sm:$0xff] (!%p1827_p11) }
 0x162   : > { %v816_v2 = vpop.xlane.xlu0 %815 }
 0x163   : > { %v818_v3 = vmul.f32 0.03125, %v816_v2 }
 0x165   : > { %v819_v4 = vsub.f32 %v810_v0, %v818_v3 }
 0x167   : > { %v820_v5 = vmul.f32 %v819_v4, %v819_v4 }
 0x169   : > { %v821_v6 = vsel %vm813_vm0, %v820_v5, 0.0 }
 0x16a   : > { %822 = vadd.xlane.f32.xlu0 %v821_v6 }
 0x1f7   : > { %v823_v7 = vpop.xlane.xlu0 %822 }
 0x1f8   : > { %v824_v8 = vmul.f32 0.03125, %v823_v7 }
 0x1fa   : > { %v825_v9 = vadd.f32 1e-12, %v824_v8 }
 0x1fc   : > { %2098 = vrsqrt.f32 %v825_v9 }
 0x206   : > { %v2099_v10 = vpop.eup %2098 }
 0x207   : > { %v827_v12 = vmul.f32 %v2099_v10, %v819_v4 }
 0x209   : > { %v834_v14 = vmul.f32 %v1828_v11, %v827_v12 }
 0x20b   : > { %v841_v15 = vadd.f32 %v1829_v13, %v834_v14 }
 0x20d   : > { %842 = vst.msk [vmem:[#allocation2] sm:$0xff] %vm813_vm0, %v841_v15 }
 0x20e PF: > { %v2100_v16 = vld [vmem:[%s2791_s6] sm:$0xff]   ;;  %v2382_v17 = vmov 0.0   ;;  %v2101_v18 = vld [vmem:[%s2791_s6 + $0x10] sm:$0xff]   ;;  %v2102_v19 = vld [vmem:[%s2791_s6 + $0x8] sm:$0xff]   ;;  %vm2383_vm1 = vmmov 0   ;;  %vm880_vm2 = vcmask 261120   ;;  %s3145_s10 = scalar_lea.vmem %s3031_s1, %s2777_s16 }
 0x20f   : > { %1897 = vmatprep.subr.bf16.mxu0 %v2382_v17  ;;  %1905 = vmatprep.subr.bf16.mxu1 %v2382_v17  ;;  %v2103_v20 = vld [vmem:[%s2791_s6 + $0x18] sm:$0xff]   ;;  %v1830_v23 = vld [vmem:[%s2796_s29] ss:$0 sm:$0xff]  ;;  %v1831_v24 = vld [vmem:[%s2796_s29 + $0x1] ss:$0 sm:$0xff]  ;;  %s2384_s5 = smov 112  }
 0x210   : > { %1898 = vmatpush3.bf16.msra.mxu0 %v2100_v16  ;;  %1901 = vmatprep.mubr.msk.bf16.mxu0 %vm2383_vm1, %v2382_v17  ;;  %vm981_vm3 = vcmask 130048   ;;  %v1840_v42 = vld [vmem:[%s3145_s10] ss:$0 sm:$0xff]  ;;  %vm1087_vm4 = vcmask 64512   ;;  %s2385_s16 = smov 96   ;;  %vm1117_vm5 = vcmask 1043456  }
 0x211   : > { %1906 = vmatpush3.bf16.msra.mxu1 %v2101_v18  ;;  %1899 = vmatprep.subr.bf16.mxu0 %v2382_v17  ;;  %v2104_v14 = vld [vmem:[%s2806_s21] sm:$0xff]   ;;  %v2105_v15 = vld [vmem:[%s2806_s21 + $0x8] sm:$0xff]   ;;  %s3146_s12 = sld [smem:[#allocation37_spill]]  ;;  %s3148_s15 = sld [smem:[#allocation30_spill]]  ;;  %vm1471_vm6 = vcmask 523264  }
 0x212   : > { %1907 = vmatprep.subr.bf16.mxu1 %v2382_v17  ;;  %1909 = vmatprep.mubr.msk.bf16.mxu1 %vm2383_vm1, %v2382_v17  ;;  %s3151_s24 = sld [smem:[#allocation38_spill]]  ;;  %p1862_p9 = scmp.ne.s32.totalorder %s2358_s27, 1 }
 0x214   : > { %v2855_v21 = vld [vmem:[#allocation2] sm:$0xff]  ;;  %1900 = vmatpush3.bf16.msra.mxu0 %v2102_v19 }
 0x215   : > { %v845_v22 = vpack.c.bf16 %v2855_v21, %v2855_v21  ;;  %1908 = vmatpush3.bf16.msra.mxu1 %v2103_v20  ;;  %1913 = vmatprep.subr.bf16.mxu0 %v2382_v17 }
 0x216   : > { %1919 = vmatprep.subr.bf16.mxu1 %v2382_v17 }
 0x217   : > { %1902 = vmatmul.mubr.msk.bf16.vlgmr.msra.gmra.mrb[0].mxu0 %vm880_vm2, %v845_v22  ;;  %s3147_s13 = scalar_lea.vmem %s3146_s12, %s2780_s9  ;;  %s3149_s26 = scalar_lea.vmem [#allocation8], %s3148_s15 }
 0x218   : > { %1910 = vmatmul.mubr.msk.bf16.vlgmr.msra.gmra.mrb[0].mxu1 %vm880_vm2, %v845_v22  ;;  %1915 = vmatprep.mubr.msk.bf16.mxu0 %vm2383_vm1, %v2382_v17  ;;  %s3150_s22 = smov %s3149_s26  ;;  %s3152_s0 = scalar_lea.vmem %s3151_s24, %s2780_s9 }
 0x219   : > { %1921 = vmatprep.mubr.msk.bf16.mxu1 %vm2383_vm1, %v2382_v17 }
 0x2ea   : > { %v918_v25 = vpop.f32.mrb[0].mxu0 }
 0x2eb   : > { %v919_v26 = vadd.f32 %v1830_v23, %v918_v25  ;;  %v1903_v27 = vpop.f32.mrb[1].mxu0  ;;  %v970_v28 = vpop.f32.mrb[0].mxu1 }
 0x2ec   : > { %v971_v29 = vadd.f32 %v1831_v24, %v970_v28  ;;  %v921_v30 = vpop.f32.mrb[2].mxu0  ;;  %v1911_v31 = vpop.f32.mrb[1].mxu1 }
 0x2ed   : > { %v976_v32 = vpack.c.bf16 %v919_v26, %v919_v26  ;;  %v1904_v33 = vpop.f32.mrb[3].mxu0  ;;  %v973_v34 = vpop.f32.mrb[2].mxu1 }
 0x2ee   : > { %v1912_v35 = vpop.f32.mrb[3].mxu1  ;;  %v977_v36 = vpack.c.bf16 %v971_v29, %v971_v29 }
 0x2ef   : > { %979 = vrot.lane.b32.xlu0 %v976_v32, %s2384_s5  ;;  %v1847_v35 = vld [vmem:[%s3147_s13] ss:$0 sm:$0xff] }
 0x2f3   : > { %1029 = vrot.lane.b32.xlu0 %v977_v36, %s2384_s5 }
 0x361   : > { %v980_v37 = vpop.permute.xlu0 %979 }
 0x362   : > { %v986_v38 = vsel %vm981_vm3, %v980_v37, 0 }
 0x363   : > { %1914 = vmatpush3.bf16.xpose.msra.mxu0 %v986_v38 }
 0x364   : > { %1925 = vmatprep.subr.bf16.mxu0 %v2382_v17 }
 0x365   : > { %v1030_v39 = vpop.permute.xlu0 %1029 }
 0x366   : > { %v1035_v40 = vsel %vm981_vm3, %v1030_v39, 0 }
 0x367   : > { %1920 = vmatpush3.bf16.xpose.msra.mxu1 %v1035_v40 }
 0x368   : > { %1931 = vmatprep.subr.bf16.mxu1 %v2382_v17 }
 0x36a   : > { %1916 = vmatmul.mubr.msk.bf16.vlgmr.msra.gmra.mrb[4].mxu0 %vm981_vm3, %v976_v32 }
 0x36b   : > { %1927 = vmatprep.mubr.msk.bf16.mxu0 %vm2383_vm1, %v2382_v17 }
 0x36e   : > { %1922 = vmatmul.mubr.msk.bf16.vlgmr.msra.gmra.mrb[4].mxu1 %vm981_vm3, %v977_v36 }
 0x36f   : > { %1933 = vmatprep.mubr.msk.bf16.mxu1 %vm2383_vm1, %v2382_v17 }
 0x43d   : > { %v1022_v41 = vpop.f32.mrb[4].mxu0 }
 0x43e   : > { %v1077_v43 = vmul.f32 0.25, %v1022_v41  ;;  %v1917_v44 = vpop.f32.mrb[5].mxu0 }
 0x43f   : > { %v1025_v45 = vpop.f32.mrb[6].mxu0 }
 0x440   : > { %v1918_v46 = vpop.f32.mrb[7].mxu0  ;;  %v1085_v47 = vadd.f32 %v1840_v42, %v1077_v43 }
 0x441   : > { %v1071_v48 = vpop.f32.mrb[4].mxu1 }
 0x442   : > { %v1078_v49 = vmul.f32 0.25, %v1071_v48  ;;  %v1923_v50 = vpop.f32.mrb[5].mxu1  ;;  %v1088_v51 = vsel %vm1087_vm4, %v1085_v47, -inf  ;;  %v2106_v48 = vld [vmem:[%s3149_s26] sm:$0xff]  }
 0x443   : > { %v1074_v52 = vpop.f32.mrb[6].mxu1  ;;  %1089 = vmax.xlane.f32.xlu1 %v1088_v51 }
 0x444   : > { %v1924_v53 = vpop.f32.mrb[7].mxu1  ;;  %v1086_v54 = vadd.f32 %v1840_v42, %v1078_v49 }
 0x445   : > { %v1848_v53 = vld [vmem:[%s3152_s0] ss:$0 sm:$0xff] }
 0x446   : > { %v1091_v55 = vsel %vm1087_vm4, %v1086_v54, -inf }
 0x447   : > { %1092 = vmax.xlane.f32.xlu1 %v1091_v55  ;;  %v1849_v55 = vld [vmem:[%s790_s7] ss:$0 sm:$0xff] }
 0x458   : > { %1112 = vrot.lane.b32.xlu1 %v976_v32, %s2385_s16 }
 0x4d0   : > { %v1090_v56 = vpop.xlane.xlu1 %1089 }
 0x4d1   : > { %v1094_v57 = vsub.f32 %v1085_v47, %v1090_v56 }
 0x4d3   : > { %v1096_v58 = vmul.f32 1.442695, %v1094_v57 }
 0x4d4   : > { %v1093_v59 = vpop.xlane.xlu1 %1092 }
 0x4d5   : > { %2112 = vpow2.f32 %v1096_v58  ;;  %v1095_v60 = vsub.f32 %v1086_v54, %v1093_v59  ;;  %v2108_v59 = vld [vmem:[%s2819_s28] sm:$0xff]  }
 0x4d7   : > { %v1098_v61 = vmul.f32 1.442695, %v1095_v60  ;;  %v2109_v60 = vld [vmem:[%s2819_s28 + $0x8] sm:$0xff]  }
 0x4d8   : > { %v1113_v62 = vpop.permute.xlu1 %1112 }
 0x4d9   : > { %2114 = vpow2.f32 %v1098_v61  ;;  %v1119_v63 = vsel %vm1117_vm5, %v1113_v62, 0  ;;  %v2110_v61 = vld [vmem:[%s2819_s28 + $0x10] sm:$0xff]   ;;  %v2111_v62 = vld [vmem:[%s2819_s28 + $0x18] sm:$0xff]  }
 0x4da   : > { %1926 = vmatpush3.bf16.msra.mxu0 %v1119_v63  ;;  %v1850_v63 = vld [vmem:[%s2833_s11] ss:$0 sm:$0xff] }
 0x4db   : > { %1937 = vmatprep.subr.bf16.mxu0 %v2382_v17 }
 0x4df   : > { %v2113_v0 = vpop.eup %2112 }
 0x4e0   : > { %v1100_v1 = vsel %vm1087_vm4, %v2113_v0, 0.0 }
 0x4e1   : > { %1101 = vadd.xlane.f32.xlu0 %v1100_v1 }
 0x4e3   : > { %v2115_v2 = vpop.eup %2114 }
 0x4e4   : > { %v1103_v3 = vsel %vm1087_vm4, %v2115_v2, 0.0 }
 0x4e5   : > { %1104 = vadd.xlane.f32.xlu1 %v1103_v3 }
 0x4f6   : > { %1161 = vrot.lane.b32.xlu1 %v977_v36, %s2385_s16 }
 0x56e   : > { %v1102_v4 = vpop.xlane.xlu0 %1101 }
 0x56f   : > { %2116 = vrcp.f32 %v1102_v4 }
 0x572   : > { %v1105_v5 = vpop.xlane.xlu1 %1104 }
 0x573   : > { %2118 = vrcp.f32 %v1105_v5 }
 0x576   : > { %v1162_v6 = vpop.permute.xlu1 %1161 }
 0x577   : > { %v1167_v7 = vsel %vm1117_vm5, %v1162_v6, 0 }
 0x578   : > { %1932 = vmatpush3.bf16.msra.mxu1 %v1167_v7 }
 0x579   : > { %v2117_v8 = vpop.eup %2116  ;;  %1943 = vmatprep.subr.bf16.mxu1 %v2382_v17 }
 0x57a   : > { %v1108_v9 = vmul.f32 %v2117_v8, %v2113_v0 }
 0x57c   : > { %v1110_v10 = vpack.c.bf16 %v1108_v9, %v1108_v9 }
 0x57d   : > { %v2119_v11 = vpop.eup %2118 }
 0x57e   : > { %v1109_v12 = vmul.f32 %v2119_v11, %v2115_v2  ;;  %1928 = vmatmul.mubr.msk.bf16.vlgmr.msra.gmra.mrb[8].mxu0 %vm1087_vm4, %v1110_v10 }
 0x57f   : > { %1939 = vmatprep.mubr.msk.bf16.mxu0 %vm2383_vm1, %v2382_v17  ;;  %1938 = vmatpush3.bf16.msra.mxu0 %v2104_v14  ;;  %v1854_v14 = vld [vmem:[%s798_s3] ss:$0 sm:$0xff] }
 0x580   : > { %v1111_v13 = vpack.c.bf16 %v1109_v12, %v1109_v12  ;;  %1949 = vmatprep.subr.bf16.mxu0 %v2382_v17 }
 0x582   : > { %1934 = vmatmul.mubr.msk.bf16.vlgmr.msra.gmra.mrb[8].mxu1 %vm1087_vm4, %v1111_v13 }
 0x583   : > { %1945 = vmatprep.mubr.msk.bf16.mxu1 %vm2383_vm1, %v2382_v17  ;;  %1944 = vmatpush3.bf16.msra.mxu1 %v2105_v15 }
 0x584   : > { %1957 = vmatprep.subr.bf16.mxu1 %v2382_v17 }
 0x651   : > { %v1155_v16 = vpop.f32.mrb[8].mxu0 }
 0x652   : > { %v1209_v18 = vpack.c.bf16 %v1155_v16, %v1155_v16  ;;  %v1929_v19 = vpop.f32.mrb[9].mxu0 }
 0x653   : > { %v1158_v20 = vpop.f32.mrb[10].mxu0 }
 0x654   : > { %v1930_v22 = vpop.f32.mrb[11].mxu0  ;;  %1940 = vmatmul.mubr.msk.bf16.vlgmr.msra.gmra.mrb[12].mxu0 %vm981_vm3, %v1209_v18 }
 0x655   : > { %v1203_v23 = vpop.f32.mrb[8].mxu1  ;;  %1953 = vmatprep.mubr.msk.bf16.mxu0 %vm2383_vm1, %v2382_v17  ;;  %1950 = vmatpush3.bf16.msra.mxu0 %v2106_v48 }
 0x656   : > { %v1210_v24 = vpack.c.bf16 %v1203_v23, %v1203_v23  ;;  %v1935_v25 = vpop.f32.mrb[9].mxu1  ;;  %1951 = vmatprep.subr.bf16.mxu0 %v2382_v17 }
 0x657   : > { %v1206_v26 = vpop.f32.mrb[10].mxu1 }
 0x658   : > { %v1936_v27 = vpop.f32.mrb[11].mxu1  ;;  %1946 = vmatmul.mubr.msk.bf16.vlgmr.msra.gmra.mrb[12].mxu1 %vm981_vm3, %v1210_v24 }
 0x659   : > { %1965 = vmatprep.mubr.msk.bf16.mxu1 %vm2383_vm1, %v2382_v17  ;;  %1958 = vmatpush3.bf16.msra.mxu1 %v2108_v59 }
 0x65a   : > { %1959 = vmatprep.subr.bf16.mxu1 %v2382_v17 }
 0x65d   : > { %1960 = vmatpush3.bf16.msra.mxu1 %v2109_v60 }
 0x65e   : > { %1961 = vmatprep.subr.bf16.mxu1 %v2382_v17 }
 0x661   : > { %1962 = vmatpush3.bf16.msra.mxu1 %v2110_v61 }
 0x662   : > { %1963 = vmatprep.subr.bf16.mxu1 %v2382_v17 }
 0x665   : > { %1964 = vmatpush3.bf16.msra.mxu1 %v2111_v62 }
 0x727   : > { %v1258_v28 = vpop.f32.mrb[12].mxu0 }
 0x728   : > { %v1941_v29 = vpop.f32.mrb[13].mxu0  ;;  %v1313_v33 = vsel %vm880_vm2, %v1258_v28, 0.0 }
 0x729   : > { %v1261_v30 = vpop.f32.mrb[14].mxu0 }
 0x72a   : > { %v1942_v31 = vpop.f32.mrb[15].mxu0 }
 0x72b   : > { %v1307_v32 = vpop.f32.mrb[12].mxu1 }
 0x72c   : > { %v1314_v34 = vsel %vm880_vm2, %v1307_v32, 0.0  ;;  %v1947_v36 = vpop.f32.mrb[13].mxu1 }
 0x72d   : > { %v1315_v37 = vadd.f32 %v1314_v34, %v1313_v33  ;;  %v1310_v38 = vpop.f32.mrb[14].mxu1  ;;  %v1860_v33 = vld [vmem:[%s801_s18] ss:$0 sm:$0xff] }
 0x72e   : > { %v1948_v39 = vpop.f32.mrb[15].mxu1 }
 0x72f   : > { %v1323_v40 = vadd.f32 %v1847_v35, %v1315_v37  ;;  %v1861_v35 = vld [vmem:[%s804_s30] ss:$0 sm:$0xff] }
 0x731   : > { %v1324_v41 = vadd.f32 %v1323_v40, %v2855_v21  ;;  %v2107_v21 = vld [vmem:[%s3150_s22 + $0x8] sm:$0xff]  }
 0x732   : > { %1952 = vmatpush3.bf16.msra.mxu0 %v2107_v21 }
 0x733   : > { %v1327_v42 = vsel %vm880_vm2, %v1324_v41, 0.0 }
 0x734   : > { %1328 = vadd.xlane.f32.xlu1 %v1327_v42 }
 0x7c1   : > { %v1329_v43 = vpop.xlane.xlu1 %1328 }
 0x7c2   : > { %v1331_v44 = vmul.f32 0.03125, %v1329_v43 }
 0x7c4   : > { %v1332_v45 = vsub.f32 %v1324_v41, %v1331_v44 }
 0x7c6   : > { %v1333_v46 = vmul.f32 %v1332_v45, %v1332_v45 }
 0x7c8   : > { %v1334_v47 = vsel %vm880_vm2, %v1333_v46, 0.0 }
 0x7c9   : > { %1335 = vadd.xlane.f32.xlu0 %v1334_v47 }
 0x856   : > { %v1336_v49 = vpop.xlane.xlu0 %1335 }
 0x857   : > { %v1337_v50 = vmul.f32 0.03125, %v1336_v49 }
 0x859   : > { %v1338_v51 = vadd.f32 1e-12, %v1337_v50 }
 0x85b   : > { %2120 = vrsqrt.f32 %v1338_v51 }
 0x865   : > { %v2121_v52 = vpop.eup %2120 }
 0x866   : > { %v1340_v54 = vmul.f32 %v2121_v52, %v1332_v45 }
 0x868   : > { %v1347_v56 = vmul.f32 %v1848_v53, %v1340_v54 }
 0x86a   : > { %v1354_v57 = vadd.f32 %v1849_v55, %v1347_v56 }
 0x86c   : > { %v1355_v58 = vpack.c.bf16 %v1354_v57, %v1354_v57 }
 0x86e   : > { %1954 = vmatmul.mubr.msk.bf16.vlgmr.msra.gmra.mrb[16].mxu0 %vm880_vm2, %v1355_v58 }
 0x941   : > { %v1416_v0 = vpop.f32.mrb[16].mxu0 }
 0x942   : > { %v1417_v1 = vadd.f32 %v1850_v63, %v1416_v0  ;;  %v1955_v2 = vpop.f32.mrb[17].mxu0 }
 0x943   : > { %v1419_v3 = vpop.f32.mrb[18].mxu0 }
 0x944   : > { %v1422_v4 = vmul.f32 %v1417_v1, %v1417_v1  ;;  %v1956_v5 = vpop.f32.mrb[19].mxu0 }
 0x946   : > { %v1423_v6 = vmul.f32 %v1422_v4, %v1417_v1 }
 0x948   : > { %v1424_v7 = vmul.f32 0.044715, %v1423_v6 }
 0x94a   : > { %v1425_v8 = vadd.f32 %v1424_v7, %v1417_v1 }
 0x94c   : > { %v1426_v9 = vmul.f32 0.7978846, %v1425_v8 }
 0x94e   : > { %2122 = vtanh.f32 %v1426_v9 }
 0x958   : > { %v2123_v10 = vpop.eup %2122 }
 0x959   : > { %v1428_v11 = vadd.f32 1.0, %v2123_v10 }
 0x95b   : > { %v1429_v12 = vmul.f32 0.5, %v1428_v11 }
 0x95d   : > { %v1430_v13 = vmul.f32 %v1429_v12, %v1417_v1 }
 0x95f   : > { %v1431_v17 = vpack.c.bf16 %v1430_v13, %v1430_v13 }
 0x961   : > { %1966 = vmatmul.mubr.msk.bf16.vlgmr.msra.gmra.mrb[16].mxu1 %vm1471_vm6, %v1431_v17 }
 0xa34   : > { %v1509_v15 = vpop.f32.mrb[16].mxu1 }
 0xa35   : > { %v1510_v16 = vadd.f32 %v1854_v14, %v1509_v15  ;;  %v1967_v18 = vpop.f32.mrb[17].mxu1 }
 0xa36   : > { %v1512_v19 = vpop.f32.mrb[18].mxu1 }
 0xa37   : > { %v1968_v20 = vpop.f32.mrb[19].mxu1  ;;  %v1515_v22 = vadd.f32 %v1510_v16, %v1354_v57 }
 0xa39   : > { %v1518_v23 = vsel %vm880_vm2, %v1515_v22, 0.0 }
 0xa3a   : > { %1519 = vadd.xlane.f32.xlu0 %v1518_v23 }
 0xac7   : > { %v1520_v24 = vpop.xlane.xlu0 %1519 }
 0xac8   : > { %v1521_v25 = vmul.f32 0.03125, %v1520_v24 }
 0xaca   : > { %v1522_v26 = vsub.f32 %v1515_v22, %v1521_v25 }
 0xacc   : > { %v1523_v27 = vmul.f32 %v1522_v26, %v1522_v26 }
 0xace   : > { %v1524_v28 = vsel %vm880_vm2, %v1523_v27, 0.0 }
 0xacf   : > { %1525 = vadd.xlane.f32.xlu0 %v1524_v28 }
 0xb5c   : > { %v1526_v29 = vpop.xlane.xlu0 %1525 }
 0xb5d   : > { %v1527_v30 = vmul.f32 0.03125, %v1526_v29 }
 0xb5f   : > { %v1528_v31 = vadd.f32 1e-12, %v1527_v30 }
 0xb61   : > { %2124 = vrsqrt.f32 %v1528_v31 }
 0xb6b   : > { %v2125_v32 = vpop.eup %2124 }
 0xb6c   : > { %v1530_v34 = vmul.f32 %v2125_v32, %v1522_v26  ;;  %1549 = sbr.rel (%p1862_p9) target bundleno = 2931 (0xb73), region = 108 }
 0xb6e   : > { %v1537_v36 = vmul.f32 %v1860_v33, %v1530_v34 }
 0xb70   : > { %v1544_v37 = vadd.f32 %v1861_v35, %v1537_v36 }
 0xb72   : > { %1545 = vst.msk [vmem:[#allocation2] sm:$0xff] %vm880_vm2, %v1544_v37  ;;  %1550 = vst.msk [vmem:[%s764_s4] sm:$0xff] (!%p1862_p9), %vm880_vm2, %v1544_v37 }
 0xb73 PF: > { %s3157_s16 = sld [smem:[#allocation20_spill]]  ;;  %s3158_s18 = sld [smem:[#allocation18_spill]] }
 0xb74   : > { %s3159_s21 = sld [smem:[#allocation28_spill]]  ;;  %s3160_s30 = sld [smem:[#allocation46_spill]] }
 0xb75   : > { %s1565_s26 = sshll.u32 %s764_s4, 4  ;;  %s2386_s17 = smov [#allocation10]   ;;  %s1566_s26 = int_to_ptr.vmem [resolvable:$true] %s1565_s26 }
 0xb76   : > { %s2244_s23 = scalar_lea.vmem %s1566_s26, 128  ;;  %s2248_s24 = sshll.u32 %s2386_s17, 4  ;;  %s2249_s24 = int_to_ptr.vmem [resolvable:$false] %s2248_s24 }
 0xb77   : > { %p2245_p12 = scmp.ne.s32.totalorder %s1566_s26, %s2244_s23  ;;  %s2250_s0 = scalar_lea.vmem %s2249_s24, 256 }
 0xb78   : > { %p2251_p13 = scmp.lt.s32.totalorder %s1566_s26, %s2249_s24  ;;  %p2252_p8 = scmp.lt.s32.totalorder %s2250_s0, %s2244_s23 }
 0xb79   : > { %s1864_s8 = sshll.u32 %s3157_s16, 7  ;;  %s3162_s27 = sand.u32 1, %s3158_s18  }
 0xb7a   : > { %s3161_s13 = smov %s3160_s30  ;;  %s2970_s15 = scalar_lea.hbm %s3160_s30, %s1864_s8 }
 0xb7b   : > { %s1552_s22 = scalar_lea.sflag [#allocation5], %s3162_s27  ;;  %p3163_p0 = scmp.ne.s32.totalorder %s3159_s21, 0 }
 0xb7c   : > { %p2253_p4 = por %p2252_p8, %p2251_p13 }
 0xb7d   : > { %p2246_p5 = pnand %p2245_p12, %p3163_p0 }
 0xb7f   : > { %p2247_p7 = pneg %p2246_p5 }
 0xb81   : > { %p2254_p3 = pnand %p2253_p4, %p2247_p7 }
 0xb83   : > { %2257 = shalt.err (!%p2254_p3)
}
 0xb84   : > { %s2258_s20 = scalar_lea.hbm %s2970_s15, 128  ;;  %s2262_s19 = scalar_lea.hbm %s3161_s13, 256 }
 0xb85   : > { %p2259_p1 = scmp.ne.s32.totalorder %s2970_s15, %s2258_s20  ;;  %p2263_p6 = scmp.lt.u32.totalorder %s2970_s15, %s3161_s13 }
 0xb86   : > { %p2264_p11 = scmp.lt.u32.totalorder %s2262_s19, %s2258_s20  ;;  %p2266_p12 = scmp.lt.u32.totalorder %s2258_s20, %s2970_s15 }
 0xb87   : > { %p2260_p10 = pnand %p2259_p1, %p3163_p0 }
 0xb88   : > { %p2265_p9 = por %p2264_p11, %p2263_p6 }
 0xb89   : > { %p2261_p2 = pneg %p2260_p10 }
 0xb8a   : > { %p2267_p5 = por %p2266_p12, %p2265_p9 }
 0xb8c   : > { %p2268_p7 = pnand %p2267_p5, %p2261_p2 }
 0xb8e   : > { %2271 = shalt.err (!%p2268_p7)
}
 0xb8f   : > { %1979 = dma.vmem_to_hbm [thread:$0]  (%p3163_p0), %s1566_s26, 128, %s2970_s15, %s1552_s22  }
 0xb90 PF: > { %s3164_s11 = sld [smem:[#allocation23_spill]]  ;;  %s3165_s7 = sld [smem:[#allocation17_spill]] }
 0xb91   : > { %s3166_s3 = sld [smem:[#allocation29_spill]] }
 0xb96   : > { %p2002_p13 = scmp.ge.s32.totalorder %s3164_s11, 2  ;;  %s1577_s2 = sand.u32 1, %s3165_s7  }
 0xb97   : > { %p3167_p8 = scmp.ne.s32.totalorder %s3166_s3, 0  ;;  %s1578_s5 = scalar_lea.sflag [#allocation5], %s1577_s2 }
 0xb99   : > { %p1996_p4 = pnand %p2002_p13, %p3167_p8 }
 0xb9b   : > { %2329 = dma.done.wait (!%p1996_p4), %s1578_s5, 128  }
 0xb9c   : > { %2331 = vsyncadd (!%p1996_p4), %s1578_s5, 4294967168  ;;  %s33_s0 = sadd.s32 1, %s3164_s11   ;;  %s3168_s21 = sld [smem:[#allocation15_spill]] }
 0xb9d   : > { %p30_p3 = scmp.ge.s32.totalorder %s33_s0, 6   ;;  %s3169_s22 = sld [smem:[#allocation16_spill]] }
 0xb9e   : > { %s3170_s23 = sld [smem:[#allocation26_spill]]  ;;  %s3171_s24 = sld [smem:[#allocation18_spill]] }
 0xb9f   : > { %s3172_s25 = sld [smem:[#allocation19_spill]]  ;;  %s3173_s26 = sld [smem:[#allocation27_spill]] }
 0xba0   : > { %s3174_s27 = sld [smem:[#allocation21_spill]]  ;;  %s3175_s28 = sld [smem:[#allocation22_spill]] }
 0xba1   : > { %s3176_s29 = sld [smem:[#allocation24_spill]]  ;;  %s3177_s30 = sld [smem:[#allocation25_spill]] }
 0xba2   :  { %32 = sbr.rel (!%p30_p3) target bundleno = 27 (0x1b), region = 196 }
 0xba9   :  { %1583 = vsyncpa [#allocation4], 1 }
 0xbaa   :  { %1585 = vsyncpa [#allocation4 + $0x1], 1 }
 0xbab   :  { %1586 = vsyncpa [#allocation7], 1 }
 0xbac   :  { %1587 = vsyncpa [#allocation5], 1 }
 0xbad   :  { %1589 = vsyncpa [#allocation5 + $0x1], 1 }

</bundles_post_ra>
